<compile_context>
chip_gen: v5e
topology: v5e:2x2
jax: 0.10.0
libtpu: 0.0.40
codegen_flags: <defaults>
</compile_context>

<pallas_src>
import jax
import jax.numpy as jnp
from jax.experimental import pallas as pl
from jax.experimental.pallas import tpu as pltpu


def _pick_vmem_limit_bytes():
    """Per-generation scoped-VMEM limit: ~56 MiB on 64-MiB parts (v7x-class),
    ~100 MiB on 128-MiB parts (v5e/v6e)."""
    cap = 128 * 1024 * 1024
    try:
        info = pltpu.get_tpu_info()
        cap = int(getattr(info, "vmem_capacity_bytes", cap))
    except Exception:
        pass
    if cap <= 64 * 1024 * 1024:
        return 56 * 1024 * 1024
    return 100 * 1024 * 1024


# ---------------------------------------------------------------------------
# Fused kernel builder
# ---------------------------------------------------------------------------
def build_fused_forward(NT, E, B, H, L, n_classes, in_node, in_edge, in_text,
                        mlp_hidden=128):
    nf_dim = in_node + in_text
    inv_nt = 1.0 / float(NT)
    inv_e = 1.0 / float(E)

    def kernel(
        nf_ref, ef_ref, gm_ref,
        s_hbm, t_hbm, tt_hbm,
        w_ne_ref, b_ne_ref, w_ee_ref, b_ee_ref,
        w_node_ref, b_node_ref, w_c_ref, b_c_ref,
        bn_h_g_ref, bn_h_b_ref, bn_e_g_ref, bn_e_b_ref,
        w1_ref, b1_ref, w2_ref, b2_ref,
        h_ref, e_ref, logits_ref,
        s_vmem, t_vmem, tt_vmem, dma_sems,
    ):
        layer = pl.program_id(0)

        # ---- first grid step: one-time incidence DMA + encoders -------------
        @pl.when(layer == 0)
        def _():
            # Single-buffered VMEM copies of the (bf16) incidence matrices.
            cp_s = pltpu.make_async_copy(s_hbm, s_vmem, dma_sems.at[0])
            cp_t = pltpu.make_async_copy(t_hbm, t_vmem, dma_sems.at[1])
            cp_tt = pltpu.make_async_copy(tt_hbm, tt_vmem, dma_sems.at[2])
            cp_s.start(); cp_t.start(); cp_tt.start()
            # Encoders overlap with the DMAs; h/e live in the VMEM-resident
            # output blocks for the rest of the layer grid.
            h_ref[...] = (
                jnp.dot(nf_ref[...], w_ne_ref[...],
                        preferred_element_type=jnp.float32) + b_ne_ref[...]
            )
            e_ref[...] = (
                jnp.dot(ef_ref[...], w_ee_ref[...],
                        preferred_element_type=jnp.float32) + b_ee_ref[...]
            )
            cp_s.wait(); cp_t.wait(); cp_tt.wait()

        h_in = h_ref[...]
        e_in = e_ref[...]

        # ---- fused node projections [A|B|D|E]: one lane-dense (H,4H) matmul --
        # bf16 weights / bf16-cast activations, f32 accumulation (documented
        # numerics deviation from the pure-f32 reference).
        proj = (
            jnp.dot(h_in.astype(jnp.bfloat16), w_node_ref[0],
                    preferred_element_type=jnp.float32)
            + b_node_ref[0]
        )
        Ah = proj[:, 0 * H:1 * H]
        BD = proj[:, 1 * H:3 * H]            # [Bh | Dh] packed for one src gather
        Eh = proj[:, 3 * H:4 * H]
        Ce = (
            jnp.dot(e_in.astype(jnp.bfloat16), w_c_ref[0],
                    preferred_element_type=jnp.float32)
            + b_c_ref[0]
        )

        # ---- message: e_ij = Ce + Dh_src + Eh_dst ----------------------------
        # Dense one-hot gathers, now bf16 x bf16 on the MXU (0/1 exact in bf16).
        bd_src = jnp.dot(s_vmem[...], BD.astype(jnp.bfloat16),
                         preferred_element_type=jnp.float32)      # (E, 2H)
        Bh_src = bd_src[:, :H]
        Dh_src = bd_src[:, H:]
        Eh_dst = jnp.dot(t_vmem[...], Eh.astype(jnp.bfloat16),
                         preferred_element_type=jnp.float32)      # (E, H)
        e_new = Ce + Dh_src + Eh_dst
        sigma = jax.nn.sigmoid(e_new)

        # ---- reduce at destination nodes (pre-transposed T_t) ---------------
        packed = jnp.concatenate([sigma * Bh_src, sigma], axis=1)    # (E, 2H)
        red = jnp.dot(tt_vmem[...], packed.astype(jnp.bfloat16),
                      preferred_element_type=jnp.float32)           # (NT, 2H)
        h_new = Ah + red[:, :H] / (red[:, H:] + 1e-6)                # exact div

        # ---- BatchNorm1d, training mode, single pass (biased var, eps=1e-5) --
        def bn(x, gamma, beta, inv_n):
            s1 = jnp.sum(x, axis=0, keepdims=True)
            s2 = jnp.sum(x * x, axis=0, keepdims=True)
            mean = s1 * inv_n
            var = s2 * inv_n - mean * mean
            return gamma * (x - mean) * jax.lax.rsqrt(var + 1e-5) + beta

        h_act = jnp.maximum(bn(h_new, bn_h_g_ref[0], bn_h_b_ref[0], inv_nt), 0.0)
        e_act = jnp.maximum(bn(e_new, bn_e_g_ref[0], bn_e_b_ref[0], inv_e), 0.0)

        # TODO(synk): nn.Dropout(0.1) is stochastic in train mode; identity here.
        h_ref[...] = h_act + h_in            # residual (input_dim == output_dim)
        e_ref[...] = e_act + e_in

        # ---- last layer: fused readout MLP on the graph-mean box features ----
        @pl.when(layer == pl.num_programs(0) - 1)
        def _():
            hid = jnp.maximum(
                jnp.dot(gm_ref[...], w1_ref[...],
                        preferred_element_type=jnp.float32) + b1_ref[...],
                0.0,
            )
            # TODO(synk): Dropout(0.1) inside the MLP treated as identity.
            logits_ref[...] = (
                jnp.dot(hid, w2_ref[...], preferred_element_type=jnp.float32)
                + b2_ref[...]
            )

    grid_spec = pltpu.PrefetchScalarGridSpec(
        num_scalar_prefetch=0,
        grid=(L,),
        in_specs=[
            pl.BlockSpec((NT, nf_dim), lambda l: (0, 0)),        # node feats
            pl.BlockSpec((E, in_edge), lambda l: (0, 0)),        # edge feats
            pl.BlockSpec((B, in_node), lambda l: (0, 0)),        # graph mean ('feat')
            pl.BlockSpec(memory_space=pl.ANY),                   # S  (src one-hot, bf16, HBM)
            pl.BlockSpec(memory_space=pl.ANY),                   # T  (dst one-hot, bf16, HBM)
            pl.BlockSpec(memory_space=pl.ANY),                   # T_t (pre-transposed, bf16, HBM)
            pl.BlockSpec((nf_dim, H), lambda l: (0, 0)),         # node encoder W
            pl.BlockSpec((1, H), lambda l: (0, 0)),              # node encoder b
            pl.BlockSpec((in_edge, H), lambda l: (0, 0)),        # edge encoder W
            pl.BlockSpec((1, H), lambda l: (0, 0)),              # edge encoder b
            pl.BlockSpec((1, H, 4 * H), lambda l: (l, 0, 0)),    # [A|B|D|E] W (bf16, streamed)
            pl.BlockSpec((1, 1, 4 * H), lambda l: (l, 0, 0)),    # [A|B|D|E] b
            pl.BlockSpec((1, H, H), lambda l: (l, 0, 0)),        # C W (bf16, streamed)
            pl.BlockSpec((1, 1, H), lambda l: (l, 0, 0)),        # C b
            pl.BlockSpec((1, 1, H), lambda l: (l, 0, 0)),        # bn_h gamma
            pl.BlockSpec((1, 1, H), lambda l: (l, 0, 0)),        # bn_h beta
            pl.BlockSpec((1, 1, H), lambda l: (l, 0, 0)),        # bn_e gamma
            pl.BlockSpec((1, 1, H), lambda l: (l, 0, 0)),        # bn_e beta
            pl.BlockSpec((in_node, mlp_hidden), lambda l: (0, 0)),   # MLP W1
            pl.BlockSpec((1, mlp_hidden), lambda l: (0, 0)),         # MLP b1
            pl.BlockSpec((mlp_hidden, n_classes), lambda l: (0, 0)), # MLP W2
            pl.BlockSpec((1, n_classes), lambda l: (0, 0)),          # MLP b2
        ],
        out_specs=(
            # Constant index maps => VMEM-resident across layers; these ARE the
            # layer state (no duplicated scratch).
            pl.BlockSpec((NT, H), lambda l: (0, 0)),
            pl.BlockSpec((E, H), lambda l: (0, 0)),
            pl.BlockSpec((B, n_classes), lambda l: (0, 0)),
        ),
        scratch_shapes=[
            pltpu.VMEM((E, NT), jnp.bfloat16),   # S   (single-buffered)
            pltpu.VMEM((E, NT), jnp.bfloat16),   # T
            pltpu.VMEM((NT, E), jnp.bfloat16),   # T_t
            pltpu.SemaphoreType.DMA((3,)),
        ],
    )

    return pl.pallas_call(
        kernel,
        out_shape=(
            jax.ShapeDtypeStruct((NT, H), jnp.float32),
            jax.ShapeDtypeStruct((E, H), jnp.float32),
            jax.ShapeDtypeStruct((B, n_classes), jnp.float32),
        ),
        grid_spec=grid_spec,
        compiler_params=pltpu.CompilerParams(
            dimension_semantics=("arbitrary",),   # layers are sequential
            vmem_limit_bytes=_pick_vmem_limit_bytes(),
        ),
    )


# ---------------------------------------------------------------------------
# Deterministic parameter init (nn.Linear-style uniform)
# ---------------------------------------------------------------------------
def init_linear(key, in_dim, out_dim):
    k1, k2 = jax.random.split(key)
    bound = 1.0 / float(in_dim) ** 0.5
    w = jax.random.uniform(k1, (in_dim, out_dim), jnp.float32, -bound, bound)
    b = jax.random.uniform(k2, (1, out_dim), jnp.float32, -bound, bound)
    return w, b


# ---------------------------------------------------------------------------
if __name__ == "__main__":
    key = jax.random.PRNGKey(0)
    kiter = iter(jax.random.split(key, 64))

    def nxt():
        return next(kiter)

    B, N = 2, 4                          # 2 graphs, 4 boxes each
    IN_NODE, IN_EDGE, TEXT_DIM = 8, 2, 2
    HIDDEN, N_CLASSES, L = 128, 10, 5    # lane-dense hidden dim

    # ----- inputs (boxes + pre-encoded texts) -----
    # TODO(synk): LayoutLMv3 text encoding is out of scope; texts are assumed
    # pre-encoded to 2-dim features as the reference's fallback path does.
    boxes = jax.random.uniform(nxt(), (B, N, IN_NODE), jnp.float32)
    texts = jax.random.uniform(nxt(), (B, N, TEXT_DIM), jnp.float32)

    # node features = cat([box(8), text(2)]) -> (B*N, 10)
    node_feats = jnp.concatenate([boxes, texts], axis=-1).reshape(
        B * N, IN_NODE + TEXT_DIM
    )

    # fully connected (j != k) directed edges; edge feat = rel_pos of first 2 coords
    src_idx, dst_idx, efeats = [], [], []
    for i in range(B):
        off = i * N
        for j in range(N):
            for k_ in range(N):
                if j != k_:
                    src_idx.append(off + j)
                    dst_idx.append(off + k_)
                    efeats.append(boxes[i, j, :2] - boxes[i, k_, :2])
    NT = B * N
    E = len(src_idx)
    edge_feats = jnp.stack(efeats, axis=0)                              # (E, 2)
    # one-hot incidence matrices stored in bf16 (0/1 exact in bf16)
    S = jax.nn.one_hot(jnp.array(src_idx), NT, dtype=jnp.bfloat16)      # (E, NT)
    T = jax.nn.one_hot(jnp.array(dst_idx), NT, dtype=jnp.bfloat16)      # (E, NT)
    T_t = T.T                                  # pre-transposed once on host

    # ----- parameters -----
    w_ne, b_ne = init_linear(nxt(), IN_NODE + TEXT_DIM, HIDDEN)   # node_encoder (in=10)
    w_ee, b_ee = init_linear(nxt(), IN_EDGE, HIDDEN)              # edge_encoder

    w_node_l, b_node_l, w_c_l, b_c_l = [], [], [], []
    bn_hg, bn_hb, bn_eg, bn_eb = [], [], [], []
    for _ in range(L):
        wa, ba = init_linear(nxt(), HIDDEN, HIDDEN)
        wb, bb = init_linear(nxt(), HIDDEN, HIDDEN)
        wc, bc = init_linear(nxt(), HIDDEN, HIDDEN)
        wd, bd = init_linear(nxt(), HIDDEN, HIDDEN)
        we_, be_ = init_linear(nxt(), HIDDEN, HIDDEN)
        # fused [A|B|D|E] projection: one lane-dense (H, 4H) matmul per layer
        w_node_l.append(jnp.concatenate([wa, wb, wd, we_], axis=1))
        b_node_l.append(jnp.concatenate([ba, bb, bd, be_], axis=1))
        w_c_l.append(wc)
        b_c_l.append(bc)
        bn_hg.append(jnp.ones((1, HIDDEN), jnp.float32))
        bn_hb.append(jnp.zeros((1, HIDDEN), jnp.float32))
        bn_eg.append(jnp.ones((1, HIDDEN), jnp.float32))
        bn_eb.append(jnp.zeros((1, HIDDEN), jnp.float32))

    # stacked per-layer parameters; matmul weights in bf16 (f32 accumulation)
    w_node = jnp.stack(w_node_l).astype(jnp.bfloat16)   # (L, H, 4H)
    b_node = jnp.stack(b_node_l)                        # (L, 1, 4H)
    w_c = jnp.stack(w_c_l).astype(jnp.bfloat16)         # (L, H, H)
    b_c = jnp.stack(b_c_l)                              # (L, 1, H)
    bn_h_g = jnp.stack(bn_hg)
    bn_h_b = jnp.stack(bn_hb)
    bn_e_g = jnp.stack(bn_eg)
    bn_e_b = jnp.stack(bn_eb)

    w1, b1 = init_linear(nxt(), IN_NODE, 128)           # MLP re-created with in=8
    w2, b2 = init_linear(nxt(), 128, N_CLASSES)

    # readout: reference uses dgl.mean_nodes(g, 'feat') == mean of ORIGINAL box feats
    graph_mean = boxes.mean(axis=1)                     # (B, IN_NODE)

    # ----- single fused forward pass -----
    fwd = build_fused_forward(NT, E, B, HIDDEN, L, N_CLASSES,
                              IN_NODE, IN_EDGE, TEXT_DIM)
    h, e, logits = fwd(
        node_feats, edge_feats, graph_mean, S, T, T_t,
        w_ne, b_ne, w_ee, b_ee,
        w_node, b_node, w_c, b_c,
        bn_h_g, bn_h_b, bn_e_g, bn_e_b,
        w1, b1, w2, b2,
    )

    # broadcast per-graph logits to every real node of that graph
    result = jnp.repeat(logits, N, axis=0)              # (NT, N_CLASSES)

    jax.block_until_ready((h, e, result))
    assert result.shape == (NT, N_CLASSES)
    print("KERNEL_OK")
</pallas_src>

<mosaic_0001>
module attributes {stable_mosaic.version = 11 : i64} {
  func.func @kernel(%arg0: i32, %arg1: memref<8x10xf32, #tpu.memory_space<vmem>>, %arg2: memref<24x2xf32, #tpu.memory_space<vmem>>, %arg3: memref<2x8xf32, #tpu.memory_space<vmem>>, %arg4: memref<24x8xbf16, #tpu.memory_space<any>>, %arg5: memref<24x8xbf16, #tpu.memory_space<any>>, %arg6: memref<8x24xbf16, #tpu.memory_space<any>>, %arg7: memref<10x128xf32, #tpu.memory_space<vmem>>, %arg8: memref<1x128xf32, #tpu.memory_space<vmem>>, %arg9: memref<2x128xf32, #tpu.memory_space<vmem>>, %arg10: memref<1x128xf32, #tpu.memory_space<vmem>>, %arg11: memref<1x128x512xbf16, #tpu.memory_space<vmem>>, %arg12: memref<1x1x512xf32, #tpu.memory_space<vmem>>, %arg13: memref<1x128x128xbf16, #tpu.memory_space<vmem>>, %arg14: memref<1x1x128xf32, #tpu.memory_space<vmem>>, %arg15: memref<1x1x128xf32, #tpu.memory_space<vmem>>, %arg16: memref<1x1x128xf32, #tpu.memory_space<vmem>>, %arg17: memref<1x1x128xf32, #tpu.memory_space<vmem>>, %arg18: memref<1x1x128xf32, #tpu.memory_space<vmem>>, %arg19: memref<8x128xf32, #tpu.memory_space<vmem>>, %arg20: memref<1x128xf32, #tpu.memory_space<vmem>>, %arg21: memref<128x10xf32, #tpu.memory_space<vmem>>, %arg22: memref<1x10xf32, #tpu.memory_space<vmem>>, %arg23: memref<8x128xf32, #tpu.memory_space<vmem>>, %arg24: memref<24x128xf32, #tpu.memory_space<vmem>>, %arg25: memref<2x10xf32, #tpu.memory_space<vmem>>, %arg26: memref<24x8xbf16, #tpu.memory_space<vmem>>, %arg27: memref<24x8xbf16, #tpu.memory_space<vmem>>, %arg28: memref<8x24xbf16, #tpu.memory_space<vmem>>, %arg29: memref<3x!tpu.dma_semaphore, #tpu.memory_space<semaphore_mem>>) attributes {dimension_semantics = [#tpu.dimension_semantics<arbitrary>], iteration_bounds = array<i64: 5>, scalar_prefetch = 0 : i64, scratch_operands = 4 : i64, tpu.core_type = #tpu.core_type<tc>, window_params = [{pipeline_mode = #tpu.pipeline_mode<synchronous>, transform_indices = @transform_0, window_bounds = array<i64: 8, 10>}, {pipeline_mode = #tpu.pipeline_mode<synchronous>, transform_indices = @transform_1, window_bounds = array<i64: 24, 2>}, {pipeline_mode = #tpu.pipeline_mode<synchronous>, transform_indices = @transform_2, window_bounds = array<i64: 2, 8>}, {}, {}, {}, {pipeline_mode = #tpu.pipeline_mode<synchronous>, transform_indices = @transform_6, window_bounds = array<i64: 10, 128>}, {pipeline_mode = #tpu.pipeline_mode<synchronous>, transform_indices = @transform_7, window_bounds = array<i64: 1, 128>}, {pipeline_mode = #tpu.pipeline_mode<synchronous>, transform_indices = @transform_8, window_bounds = array<i64: 2, 128>}, {pipeline_mode = #tpu.pipeline_mode<synchronous>, transform_indices = @transform_9, window_bounds = array<i64: 1, 128>}, {transform_indices = @transform_10, window_bounds = array<i64: 1, 128, 512>}, {transform_indices = @transform_11, window_bounds = array<i64: 1, 1, 512>}, {transform_indices = @transform_12, window_bounds = array<i64: 1, 128, 128>}, {transform_indices = @transform_13, window_bounds = array<i64: 1, 1, 128>}, {transform_indices = @transform_14, window_bounds = array<i64: 1, 1, 128>}, {transform_indices = @transform_15, window_bounds = array<i64: 1, 1, 128>}, {transform_indices = @transform_16, window_bounds = array<i64: 1, 1, 128>}, {transform_indices = @transform_17, window_bounds = array<i64: 1, 1, 128>}, {pipeline_mode = #tpu.pipeline_mode<synchronous>, transform_indices = @transform_18, window_bounds = array<i64: 8, 128>}, {pipeline_mode = #tpu.pipeline_mode<synchronous>, transform_indices = @transform_19, window_bounds = array<i64: 1, 128>}, {pipeline_mode = #tpu.pipeline_mode<synchronous>, transform_indices = @transform_20, window_bounds = array<i64: 128, 10>}, {pipeline_mode = #tpu.pipeline_mode<synchronous>, transform_indices = @transform_21, window_bounds = array<i64: 1, 10>}, {pipeline_mode = #tpu.pipeline_mode<synchronous>, transform_indices = @transform_22, window_bounds = array<i64: 8, 128>}, {pipeline_mode = #tpu.pipeline_mode<synchronous>, transform_indices = @transform_23, window_bounds = array<i64: 24, 128>}, {pipeline_mode = #tpu.pipeline_mode<synchronous>, transform_indices = @transform_24, window_bounds = array<i64: 2, 10>}]} {
    %c0_i32 = arith.constant 0 : i32
    %0 = arith.cmpi eq, %arg0, %c0_i32 : i32
    %1 = arith.extui %0 : i1 to i32
    %c0_i32_0 = arith.constant 0 : i32
    %2 = arith.cmpi ne, %1, %c0_i32_0 : i32
    scf.if %2 {
      %c0_i32_57 = arith.constant 0 : i32
      %113 = tpu.memref_slice %arg29[%c0_i32_57] : memref<3x!tpu.dma_semaphore, #tpu.memory_space<semaphore_mem>> -> memref<1x!tpu.dma_semaphore, #tpu.memory_space<semaphore_mem>>
      %114 = tpu.memref_squeeze %113 : memref<1x!tpu.dma_semaphore, #tpu.memory_space<semaphore_mem>> -> memref<!tpu.dma_semaphore, #tpu.memory_space<semaphore_mem>>
      tpu.enqueue_dma source(%arg4 : memref<24x8xbf16, #tpu.memory_space<any>>) target(%arg26 : memref<24x8xbf16, #tpu.memory_space<vmem>>) target_semaphore(%114 : memref<!tpu.dma_semaphore, #tpu.memory_space<semaphore_mem>>)
      %c1_i32 = arith.constant 1 : i32
      %115 = tpu.memref_slice %arg29[%c1_i32] : memref<3x!tpu.dma_semaphore, #tpu.memory_space<semaphore_mem>> -> memref<1x!tpu.dma_semaphore, #tpu.memory_space<semaphore_mem>>
      %116 = tpu.memref_squeeze %115 : memref<1x!tpu.dma_semaphore, #tpu.memory_space<semaphore_mem>> -> memref<!tpu.dma_semaphore, #tpu.memory_space<semaphore_mem>>
      tpu.enqueue_dma source(%arg5 : memref<24x8xbf16, #tpu.memory_space<any>>) target(%arg27 : memref<24x8xbf16, #tpu.memory_space<vmem>>) target_semaphore(%116 : memref<!tpu.dma_semaphore, #tpu.memory_space<semaphore_mem>>)
      %c2_i32 = arith.constant 2 : i32
      %117 = tpu.memref_slice %arg29[%c2_i32] : memref<3x!tpu.dma_semaphore, #tpu.memory_space<semaphore_mem>> -> memref<1x!tpu.dma_semaphore, #tpu.memory_space<semaphore_mem>>
      %118 = tpu.memref_squeeze %117 : memref<1x!tpu.dma_semaphore, #tpu.memory_space<semaphore_mem>> -> memref<!tpu.dma_semaphore, #tpu.memory_space<semaphore_mem>>
      tpu.enqueue_dma source(%arg6 : memref<8x24xbf16, #tpu.memory_space<any>>) target(%arg28 : memref<8x24xbf16, #tpu.memory_space<vmem>>) target_semaphore(%118 : memref<!tpu.dma_semaphore, #tpu.memory_space<semaphore_mem>>)
      %c0_58 = arith.constant 0 : index
      %c0_59 = arith.constant 0 : index
      %119 = vector.load %arg1[%c0_58, %c0_59] : memref<8x10xf32, #tpu.memory_space<vmem>>, vector<8x10xf32>
      %c0_60 = arith.constant 0 : index
      %c0_61 = arith.constant 0 : index
      %120 = vector.load %arg7[%c0_60, %c0_61] : memref<10x128xf32, #tpu.memory_space<vmem>>, vector<10x128xf32>
      %cst_62 = arith.constant dense<0.000000e+00> : vector<8x128xf32>
      %121 = tpu.matmul %119, %120, %cst_62 {dimension_numbers = #tpu.dot_dimension_numbers<[1], [0], [0], [1], [0, 0, 1, 1], [], []>} : vector<8x10xf32>, vector<10x128xf32>, vector<8x128xf32> -> vector<8x128xf32>
      %c0_63 = arith.constant 0 : index
      %c0_64 = arith.constant 0 : index
      %122 = vector.load %arg8[%c0_63, %c0_64] : memref<1x128xf32, #tpu.memory_space<vmem>>, vector<1x128xf32>
      %123 = vector.broadcast %122 : vector<1x128xf32> to vector<8x128xf32>
      %124 = arith.addf %121, %123 : vector<8x128xf32>
      %c0_65 = arith.constant 0 : index
      %c0_66 = arith.constant 0 : index
      %125 = vector.load %arg23[%c0_65, %c0_66] : memref<8x128xf32, #tpu.memory_space<vmem>>, vector<8x128xf32>
      tpu.vector_store %arg23[%c0_65, %c0_66], %124 {strides = array<i32>} : memref<8x128xf32, #tpu.memory_space<vmem>>, vector<8x128xf32>,
      %c0_67 = arith.constant 0 : index
      %c0_68 = arith.constant 0 : index
      %126 = vector.load %arg2[%c0_67, %c0_68] : memref<24x2xf32, #tpu.memory_space<vmem>>, vector<24x2xf32>
      %c0_69 = arith.constant 0 : index
      %c0_70 = arith.constant 0 : index
      %127 = vector.load %arg9[%c0_69, %c0_70] : memref<2x128xf32, #tpu.memory_space<vmem>>, vector<2x128xf32>
      %cst_71 = arith.constant dense<0.000000e+00> : vector<24x128xf32>
      %128 = tpu.matmul %126, %127, %cst_71 {dimension_numbers = #tpu.dot_dimension_numbers<[1], [0], [0], [1], [0, 0, 1, 1], [], []>} : vector<24x2xf32>, vector<2x128xf32>, vector<24x128xf32> -> vector<24x128xf32>
      %c0_72 = arith.constant 0 : index
      %c0_73 = arith.constant 0 : index
      %129 = vector.load %arg10[%c0_72, %c0_73] : memref<1x128xf32, #tpu.memory_space<vmem>>, vector<1x128xf32>
      %130 = vector.broadcast %129 : vector<1x128xf32> to vector<24x128xf32>
      %131 = arith.addf %128, %130 : vector<24x128xf32>
      %c0_74 = arith.constant 0 : index
      %c0_75 = arith.constant 0 : index
      %132 = vector.load %arg24[%c0_74, %c0_75] : memref<24x128xf32, #tpu.memory_space<vmem>>, vector<24x128xf32>
      tpu.vector_store %arg24[%c0_74, %c0_75], %131 {strides = array<i32>} : memref<24x128xf32, #tpu.memory_space<vmem>>, vector<24x128xf32>,
      %c0_i32_76 = arith.constant 0 : i32
      %133 = tpu.memref_slice %arg29[%c0_i32_76] : memref<3x!tpu.dma_semaphore, #tpu.memory_space<semaphore_mem>> -> memref<1x!tpu.dma_semaphore, #tpu.memory_space<semaphore_mem>>
      %134 = tpu.memref_squeeze %133 : memref<1x!tpu.dma_semaphore, #tpu.memory_space<semaphore_mem>> -> memref<!tpu.dma_semaphore, #tpu.memory_space<semaphore_mem>>
      tpu.wait_dma2 semaphore(%134 : memref<!tpu.dma_semaphore, #tpu.memory_space<semaphore_mem>>) src(%arg4 : memref<24x8xbf16, #tpu.memory_space<any>>) dst(%arg26 : memref<24x8xbf16, #tpu.memory_space<vmem>>)
      %c1_i32_77 = arith.constant 1 : i32
      %135 = tpu.memref_slice %arg29[%c1_i32_77] : memref<3x!tpu.dma_semaphore, #tpu.memory_space<semaphore_mem>> -> memref<1x!tpu.dma_semaphore, #tpu.memory_space<semaphore_mem>>
      %136 = tpu.memref_squeeze %135 : memref<1x!tpu.dma_semaphore, #tpu.memory_space<semaphore_mem>> -> memref<!tpu.dma_semaphore, #tpu.memory_space<semaphore_mem>>
      tpu.wait_dma2 semaphore(%136 : memref<!tpu.dma_semaphore, #tpu.memory_space<semaphore_mem>>) src(%arg5 : memref<24x8xbf16, #tpu.memory_space<any>>) dst(%arg27 : memref<24x8xbf16, #tpu.memory_space<vmem>>)
      %c2_i32_78 = arith.constant 2 : i32
      %137 = tpu.memref_slice %arg29[%c2_i32_78] : memref<3x!tpu.dma_semaphore, #tpu.memory_space<semaphore_mem>> -> memref<1x!tpu.dma_semaphore, #tpu.memory_space<semaphore_mem>>
      %138 = tpu.memref_squeeze %137 : memref<1x!tpu.dma_semaphore, #tpu.memory_space<semaphore_mem>> -> memref<!tpu.dma_semaphore, #tpu.memory_space<semaphore_mem>>
      tpu.wait_dma2 semaphore(%138 : memref<!tpu.dma_semaphore, #tpu.memory_space<semaphore_mem>>) src(%arg6 : memref<8x24xbf16, #tpu.memory_space<any>>) dst(%arg28 : memref<8x24xbf16, #tpu.memory_space<vmem>>)
    } else {
    }
    %c0 = arith.constant 0 : index
    %c0_1 = arith.constant 0 : index
    %3 = vector.load %arg23[%c0, %c0_1] : memref<8x128xf32, #tpu.memory_space<vmem>>, vector<8x128xf32>
    %c0_2 = arith.constant 0 : index
    %c0_3 = arith.constant 0 : index
    %4 = vector.load %arg24[%c0_2, %c0_3] : memref<24x128xf32, #tpu.memory_space<vmem>>, vector<24x128xf32>
    %5 = arith.truncf %3 : vector<8x128xf32> to vector<8x128xbf16>
    %c0_4 = arith.constant 0 : index
    %c0_5 = arith.constant 0 : index
    %c0_6 = arith.constant 0 : index
    %6 = vector.load %arg11[%c0_4, %c0_5, %c0_6] : memref<1x128x512xbf16, #tpu.memory_space<vmem>>, vector<1x128x512xbf16>
    %7 = vector.shape_cast %6 : vector<1x128x512xbf16> to vector<128x512xbf16>
    %cst = arith.constant dense<0.000000e+00> : vector<8x512xf32>
    %8 = tpu.matmul %5, %7, %cst {dimension_numbers = #tpu.dot_dimension_numbers<[1], [0], [0], [1], [0, 0, 1, 1], [], []>} : vector<8x128xbf16>, vector<128x512xbf16>, vector<8x512xf32> -> vector<8x512xf32>
    %c0_7 = arith.constant 0 : index
    %c0_8 = arith.constant 0 : index
    %c0_9 = arith.constant 0 : index
    %9 = vector.load %arg12[%c0_7, %c0_8, %c0_9] : memref<1x1x512xf32, #tpu.memory_space<vmem>>, vector<1x1x512xf32>
    %10 = vector.shape_cast %9 : vector<1x1x512xf32> to vector<1x512xf32>
    %11 = vector.broadcast %10 : vector<1x512xf32> to vector<8x512xf32>
    %12 = arith.addf %8, %11 : vector<8x512xf32>
    %13 = vector.extract_strided_slice %12 {offsets = [0, 0], sizes = [8, 128], strides = [1, 1]} : vector<8x512xf32> to vector<8x128xf32>
    %14 = vector.extract_strided_slice %12 {offsets = [0, 128], sizes = [8, 256], strides = [1, 1]} : vector<8x512xf32> to vector<8x256xf32>
    %15 = vector.extract_strided_slice %12 {offsets = [0, 384], sizes = [8, 128], strides = [1, 1]} : vector<8x512xf32> to vector<8x128xf32>
    %16 = arith.truncf %4 : vector<24x128xf32> to vector<24x128xbf16>
    %c0_10 = arith.constant 0 : index
    %c0_11 = arith.constant 0 : index
    %c0_12 = arith.constant 0 : index
    %17 = vector.load %arg13[%c0_10, %c0_11, %c0_12] : memref<1x128x128xbf16, #tpu.memory_space<vmem>>, vector<1x128x128xbf16>
    %18 = vector.shape_cast %17 : vector<1x128x128xbf16> to vector<128x128xbf16>
    %cst_13 = arith.constant dense<0.000000e+00> : vector<24x128xf32>
    %19 = tpu.matmul %16, %18, %cst_13 {dimension_numbers = #tpu.dot_dimension_numbers<[1], [0], [0], [1], [0, 0, 1, 1], [], []>} : vector<24x128xbf16>, vector<128x128xbf16>, vector<24x128xf32> -> vector<24x128xf32>
    %c0_14 = arith.constant 0 : index
    %c0_15 = arith.constant 0 : index
    %c0_16 = arith.constant 0 : index
    %20 = vector.load %arg14[%c0_14, %c0_15, %c0_16] : memref<1x1x128xf32, #tpu.memory_space<vmem>>, vector<1x1x128xf32>
    %21 = vector.shape_cast %20 : vector<1x1x128xf32> to vector<1x128xf32>
    %22 = vector.broadcast %21 : vector<1x128xf32> to vector<24x128xf32>
    %23 = arith.addf %19, %22 : vector<24x128xf32>
    %c0_17 = arith.constant 0 : index
    %c0_18 = arith.constant 0 : index
    %24 = vector.load %arg26[%c0_17, %c0_18] : memref<24x8xbf16, #tpu.memory_space<vmem>>, vector<24x8xbf16>
    %25 = arith.truncf %14 : vector<8x256xf32> to vector<8x256xbf16>
    %cst_19 = arith.constant dense<0.000000e+00> : vector<24x256xf32>
    %26 = tpu.matmul %24, %25, %cst_19 {dimension_numbers = #tpu.dot_dimension_numbers<[1], [0], [0], [1], [0, 0, 1, 1], [], []>} : vector<24x8xbf16>, vector<8x256xbf16>, vector<24x256xf32> -> vector<24x256xf32>
    %27 = vector.extract_strided_slice %26 {offsets = [0, 0], sizes = [24, 128], strides = [1, 1]} : vector<24x256xf32> to vector<24x128xf32>
    %28 = vector.extract_strided_slice %26 {offsets = [0, 128], sizes = [24, 128], strides = [1, 1]} : vector<24x256xf32> to vector<24x128xf32>
    %c0_20 = arith.constant 0 : index
    %c0_21 = arith.constant 0 : index
    %29 = vector.load %arg27[%c0_20, %c0_21] : memref<24x8xbf16, #tpu.memory_space<vmem>>, vector<24x8xbf16>
    %30 = arith.truncf %15 : vector<8x128xf32> to vector<8x128xbf16>
    %cst_22 = arith.constant dense<0.000000e+00> : vector<24x128xf32>
    %31 = tpu.matmul %29, %30, %cst_22 {dimension_numbers = #tpu.dot_dimension_numbers<[1], [0], [0], [1], [0, 0, 1, 1], [], []>} : vector<24x8xbf16>, vector<8x128xbf16>, vector<24x128xf32> -> vector<24x128xf32>
    %32 = arith.addf %23, %28 : vector<24x128xf32>
    %33 = arith.addf %32, %31 : vector<24x128xf32>
    %34 = arith.negf %33 : vector<24x128xf32>
    %35 = math.exp %34 : vector<24x128xf32>
    %cst_23 = arith.constant 1.000000e+00 : f32
    %36 = vector.broadcast %cst_23 : f32 to vector<24x128xf32>
    %37 = arith.addf %36, %35 : vector<24x128xf32>
    %38 = arith.divf %36, %37 : vector<24x128xf32>
    %39 = arith.mulf %38, %27 : vector<24x128xf32>
    %40 = tpu.concatenate %39, %38 in 1 : vector<24x128xf32>, vector<24x128xf32> -> vector<24x256xf32>
    %c0_24 = arith.constant 0 : index
    %c0_25 = arith.constant 0 : index
    %41 = vector.load %arg28[%c0_24, %c0_25] : memref<8x24xbf16, #tpu.memory_space<vmem>>, vector<8x24xbf16>
    %42 = arith.truncf %40 : vector<24x256xf32> to vector<24x256xbf16>
    %cst_26 = arith.constant dense<0.000000e+00> : vector<8x256xf32>
    %43 = tpu.matmul %41, %42, %cst_26 {dimension_numbers = #tpu.dot_dimension_numbers<[1], [0], [0], [1], [0, 0, 1, 1], [], []>} : vector<8x24xbf16>, vector<24x256xbf16>, vector<8x256xf32> -> vector<8x256xf32>
    %44 = vector.extract_strided_slice %43 {offsets = [0, 0], sizes = [8, 128], strides = [1, 1]} : vector<8x256xf32> to vector<8x128xf32>
    %45 = vector.extract_strided_slice %43 {offsets = [0, 128], sizes = [8, 128], strides = [1, 1]} : vector<8x256xf32> to vector<8x128xf32>
    %cst_27 = arith.constant 9.99999997E-7 : f32
    %46 = vector.broadcast %cst_27 : f32 to vector<8x128xf32>
    %47 = arith.addf %45, %46 : vector<8x128xf32>
    %48 = arith.divf %44, %47 : vector<8x128xf32>
    %49 = arith.addf %13, %48 : vector<8x128xf32>
    %c0_28 = arith.constant 0 : index
    %c0_29 = arith.constant 0 : index
    %c0_30 = arith.constant 0 : index
    %50 = vector.load %arg15[%c0_28, %c0_29, %c0_30] : memref<1x1x128xf32, #tpu.memory_space<vmem>>, vector<1x1x128xf32>
    %51 = vector.shape_cast %50 : vector<1x1x128xf32> to vector<1x128xf32>
    %c0_31 = arith.constant 0 : index
    %c0_32 = arith.constant 0 : index
    %c0_33 = arith.constant 0 : index
    %52 = vector.load %arg16[%c0_31, %c0_32, %c0_33] : memref<1x1x128xf32, #tpu.memory_space<vmem>>, vector<1x1x128xf32>
    %53 = vector.shape_cast %52 : vector<1x1x128xf32> to vector<1x128xf32>
    %cst_34 = arith.constant dense<0.000000e+00> : vector<128xf32>
    %54 = vector.multi_reduction <add>, %49, %cst_34 [0] : vector<8x128xf32> to vector<128xf32>
    %55 = vector.shape_cast %54 : vector<128xf32> to vector<1x128xf32>
    %56 = arith.mulf %49, %49 : vector<8x128xf32>
    %cst_35 = arith.constant dense<0.000000e+00> : vector<128xf32>
    %57 = vector.multi_reduction <add>, %56, %cst_35 [0] : vector<8x128xf32> to vector<128xf32>
    %58 = vector.shape_cast %57 : vector<128xf32> to vector<1x128xf32>
    %cst_36 = arith.constant 1.250000e-01 : f32
    %59 = vector.broadcast %cst_36 : f32 to vector<1x128xf32>
    %60 = arith.mulf %55, %59 : vector<1x128xf32>
    %cst_37 = arith.constant 1.250000e-01 : f32
    %61 = vector.broadcast %cst_37 : f32 to vector<1x128xf32>
    %62 = arith.mulf %58, %61 : vector<1x128xf32>
    %63 = arith.mulf %60, %60 : vector<1x128xf32>
    %64 = arith.subf %62, %63 : vector<1x128xf32>
    %65 = vector.broadcast %60 : vector<1x128xf32> to vector<8x128xf32>
    %66 = arith.subf %49, %65 : vector<8x128xf32>
    %67 = vector.broadcast %51 : vector<1x128xf32> to vector<8x128xf32>
    %68 = arith.mulf %67, %66 : vector<8x128xf32>
    %cst_38 = arith.constant 9.99999974E-6 : f32
    %69 = vector.broadcast %cst_38 : f32 to vector<1x128xf32>
    %70 = arith.addf %64, %69 : vector<1x128xf32>
    %71 = math.rsqrt %70 : vector<1x128xf32>
    %72 = vector.broadcast %71 : vector<1x128xf32> to vector<8x128xf32>
    %73 = arith.mulf %68, %72 : vector<8x128xf32>
    %74 = vector.broadcast %53 : vector<1x128xf32> to vector<8x128xf32>
    %75 = arith.addf %73, %74 : vector<8x128xf32>
    %cst_39 = arith.constant 0.000000e+00 : f32
    %76 = vector.broadcast %cst_39 : f32 to vector<8x128xf32>
    %77 = arith.maximumf %75, %76 : vector<8x128xf32>
    %c0_40 = arith.constant 0 : index
    %c0_41 = arith.constant 0 : index
    %c0_42 = arith.constant 0 : index
    %78 = vector.load %arg17[%c0_40, %c0_41, %c0_42] : memref<1x1x128xf32, #tpu.memory_space<vmem>>, vector<1x1x128xf32>
    %79 = vector.shape_cast %78 : vector<1x1x128xf32> to vector<1x128xf32>
    %c0_43 = arith.constant 0 : index
    %c0_44 = arith.constant 0 : index
    %c0_45 = arith.constant 0 : index
    %80 = vector.load %arg18[%c0_43, %c0_44, %c0_45] : memref<1x1x128xf32, #tpu.memory_space<vmem>>, vector<1x1x128xf32>
    %81 = vector.shape_cast %80 : vector<1x1x128xf32> to vector<1x128xf32>
    %cst_46 = arith.constant dense<0.000000e+00> : vector<128xf32>
    %82 = vector.multi_reduction <add>, %33, %cst_46 [0] : vector<24x128xf32> to vector<128xf32>
    %83 = vector.shape_cast %82 : vector<128xf32> to vector<1x128xf32>
    %84 = arith.mulf %33, %33 : vector<24x128xf32>
    %cst_47 = arith.constant dense<0.000000e+00> : vector<128xf32>
    %85 = vector.multi_reduction <add>, %84, %cst_47 [0] : vector<24x128xf32> to vector<128xf32>
    %86 = vector.shape_cast %85 : vector<128xf32> to vector<1x128xf32>
    %cst_48 = arith.constant 0.0416666679 : f32
    %87 = vector.broadcast %cst_48 : f32 to vector<1x128xf32>
    %88 = arith.mulf %83, %87 : vector<1x128xf32>
    %cst_49 = arith.constant 0.0416666679 : f32
    %89 = vector.broadcast %cst_49 : f32 to vector<1x128xf32>
    %90 = arith.mulf %86, %89 : vector<1x128xf32>
    %91 = arith.mulf %88, %88 : vector<1x128xf32>
    %92 = arith.subf %90, %91 : vector<1x128xf32>
    %93 = vector.broadcast %88 : vector<1x128xf32> to vector<24x128xf32>
    %94 = arith.subf %33, %93 : vector<24x128xf32>
    %95 = vector.broadcast %79 : vector<1x128xf32> to vector<24x128xf32>
    %96 = arith.mulf %95, %94 : vector<24x128xf32>
    %cst_50 = arith.constant 9.99999974E-6 : f32
    %97 = vector.broadcast %cst_50 : f32 to vector<1x128xf32>
    %98 = arith.addf %92, %97 : vector<1x128xf32>
    %99 = math.rsqrt %98 : vector<1x128xf32>
    %100 = vector.broadcast %99 : vector<1x128xf32> to vector<24x128xf32>
    %101 = arith.mulf %96, %100 : vector<24x128xf32>
    %102 = vector.broadcast %81 : vector<1x128xf32> to vector<24x128xf32>
    %103 = arith.addf %101, %102 : vector<24x128xf32>
    %cst_51 = arith.constant 0.000000e+00 : f32
    %104 = vector.broadcast %cst_51 : f32 to vector<24x128xf32>
    %105 = arith.maximumf %103, %104 : vector<24x128xf32>
    %106 = arith.addf %77, %3 : vector<8x128xf32>
    %c0_52 = arith.constant 0 : index
    %c0_53 = arith.constant 0 : index
    %107 = vector.load %arg23[%c0_52, %c0_53] : memref<8x128xf32, #tpu.memory_space<vmem>>, vector<8x128xf32>
    tpu.vector_store %arg23[%c0_52, %c0_53], %106 {strides = array<i32>} : memref<8x128xf32, #tpu.memory_space<vmem>>, vector<8x128xf32>,
    %108 = arith.addf %105, %4 : vector<24x128xf32>
    %c0_54 = arith.constant 0 : index
    %c0_55 = arith.constant 0 : index
    %109 = vector.load %arg24[%c0_54, %c0_55] : memref<24x128xf32, #tpu.memory_space<vmem>>, vector<24x128xf32>
    tpu.vector_store %arg24[%c0_54, %c0_55], %108 {strides = array<i32>} : memref<24x128xf32, #tpu.memory_space<vmem>>, vector<24x128xf32>,
    %c4_i32 = arith.constant 4 : i32
    %110 = arith.cmpi eq, %arg0, %c4_i32 : i32
    %111 = arith.extui %110 : i1 to i32
    %c0_i32_56 = arith.constant 0 : i32
    %112 = arith.cmpi ne, %111, %c0_i32_56 : i32
    scf.if %112 {
      %c0_57 = arith.constant 0 : index
      %c0_58 = arith.constant 0 : index
      %113 = vector.load %arg3[%c0_57, %c0_58] : memref<2x8xf32, #tpu.memory_space<vmem>>, vector<2x8xf32>
      %c0_59 = arith.constant 0 : index
      %c0_60 = arith.constant 0 : index
      %114 = vector.load %arg19[%c0_59, %c0_60] : memref<8x128xf32, #tpu.memory_space<vmem>>, vector<8x128xf32>
      %cst_61 = arith.constant dense<0.000000e+00> : vector<2x128xf32>
      %115 = tpu.matmul %113, %114, %cst_61 {dimension_numbers = #tpu.dot_dimension_numbers<[1], [0], [0], [1], [0, 0, 1, 1], [], []>} : vector<2x8xf32>, vector<8x128xf32>, vector<2x128xf32> -> vector<2x128xf32>
      %c0_62 = arith.constant 0 : index
      %c0_63 = arith.constant 0 : index
      %116 = vector.load %arg20[%c0_62, %c0_63] : memref<1x128xf32, #tpu.memory_space<vmem>>, vector<1x128xf32>
      %117 = vector.broadcast %116 : vector<1x128xf32> to vector<2x128xf32>
      %118 = arith.addf %115, %117 : vector<2x128xf32>
      %cst_64 = arith.constant 0.000000e+00 : f32
      %119 = vector.broadcast %cst_64 : f32 to vector<2x128xf32>
      %120 = arith.maximumf %118, %119 : vector<2x128xf32>
      %c0_65 = arith.constant 0 : index
      %c0_66 = arith.constant 0 : index
      %121 = vector.load %arg21[%c0_65, %c0_66] : memref<128x10xf32, #tpu.memory_space<vmem>>, vector<128x10xf32>
      %cst_67 = arith.constant dense<0.000000e+00> : vector<2x10xf32>
      %122 = tpu.matmul %120, %121, %cst_67 {dimension_numbers = #tpu.dot_dimension_numbers<[1], [0], [0], [1], [0, 0, 1, 1], [], []>} : vector<2x128xf32>, vector<128x10xf32>, vector<2x10xf32> -> vector<2x10xf32>
      %c0_68 = arith.constant 0 : index
      %c0_69 = arith.constant 0 : index
      %123 = vector.load %arg22[%c0_68, %c0_69] : memref<1x10xf32, #tpu.memory_space<vmem>>, vector<1x10xf32>
      %124 = vector.broadcast %123 : vector<1x10xf32> to vector<2x10xf32>
      %125 = arith.addf %122, %124 : vector<2x10xf32>
      %c0_70 = arith.constant 0 : index
      %c0_71 = arith.constant 0 : index
      %126 = vector.load %arg25[%c0_70, %c0_71] : memref<2x10xf32, #tpu.memory_space<vmem>>, vector<2x10xf32>
      tpu.vector_store %arg25[%c0_70, %c0_71], %125 {strides = array<i32>} : memref<2x10xf32, #tpu.memory_space<vmem>>, vector<2x10xf32>,
    } else {
    }
    return
  }
  func.func @transform_0(%arg0: i32) -> (i32, i32) {
    %c0_i32 = arith.constant 0 : i32
    %c0_i32_0 = arith.constant 0 : i32
    %c0_i32_1 = arith.constant 0 : i32
    return %c0_i32, %c0_i32_0 : i32, i32
  }
  func.func @transform_1(%arg0: i32) -> (i32, i32) {
    %c0_i32 = arith.constant 0 : i32
    %c0_i32_0 = arith.constant 0 : i32
    %c0_i32_1 = arith.constant 0 : i32
    return %c0_i32, %c0_i32_0 : i32, i32
  }
  func.func @transform_2(%arg0: i32) -> (i32, i32) {
    %c0_i32 = arith.constant 0 : i32
    %c0_i32_0 = arith.constant 0 : i32
    %c0_i32_1 = arith.constant 0 : i32
    return %c0_i32, %c0_i32_0 : i32, i32
  }
  func.func @transform_6(%arg0: i32) -> (i32, i32) {
    %c0_i32 = arith.constant 0 : i32
    %c0_i32_0 = arith.constant 0 : i32
    %c0_i32_1 = arith.constant 0 : i32
    return %c0_i32, %c0_i32_0 : i32, i32
  }
  func.func @transform_7(%arg0: i32) -> (i32, i32) {
    %c0_i32 = arith.constant 0 : i32
    %c0_i32_0 = arith.constant 0 : i32
    %c0_i32_1 = arith.constant 0 : i32
    return %c0_i32, %c0_i32_0 : i32, i32
  }
  func.func @transform_8(%arg0: i32) -> (i32, i32) {
    %c0_i32 = arith.constant 0 : i32
    %c0_i32_0 = arith.constant 0 : i32
    %c0_i32_1 = arith.constant 0 : i32
    return %c0_i32, %c0_i32_0 : i32, i32
  }
  func.func @transform_9(%arg0: i32) -> (i32, i32) {
    %c0_i32 = arith.constant 0 : i32
    %c0_i32_0 = arith.constant 0 : i32
    %c0_i32_1 = arith.constant 0 : i32
    return %c0_i32, %c0_i32_0 : i32, i32
  }
  func.func @transform_10(%arg0: i32) -> (i32, i32, i32) {
    %c0_i32 = arith.constant 0 : i32
    %c0_i32_0 = arith.constant 0 : i32
    %c0_i32_1 = arith.constant 0 : i32
    return %arg0, %c0_i32, %c0_i32_0 : i32, i32, i32
  }
  func.func @transform_11(%arg0: i32) -> (i32, i32, i32) {
    %c0_i32 = arith.constant 0 : i32
    %c0_i32_0 = arith.constant 0 : i32
    %c0_i32_1 = arith.constant 0 : i32
    return %arg0, %c0_i32, %c0_i32_0 : i32, i32, i32
  }
  func.func @transform_12(%arg0: i32) -> (i32, i32, i32) {
    %c0_i32 = arith.constant 0 : i32
    %c0_i32_0 = arith.constant 0 : i32
    %c0_i32_1 = arith.constant 0 : i32
    return %arg0, %c0_i32, %c0_i32_0 : i32, i32, i32
  }
  func.func @transform_13(%arg0: i32) -> (i32, i32, i32) {
    %c0_i32 = arith.constant 0 : i32
    %c0_i32_0 = arith.constant 0 : i32
    %c0_i32_1 = arith.constant 0 : i32
    return %arg0, %c0_i32, %c0_i32_0 : i32, i32, i32
  }
  func.func @transform_14(%arg0: i32) -> (i32, i32, i32) {
    %c0_i32 = arith.constant 0 : i32
    %c0_i32_0 = arith.constant 0 : i32
    %c0_i32_1 = arith.constant 0 : i32
    return %arg0, %c0_i32, %c0_i32_0 : i32, i32, i32
  }
  func.func @transform_15(%arg0: i32) -> (i32, i32, i32) {
    %c0_i32 = arith.constant 0 : i32
    %c0_i32_0 = arith.constant 0 : i32
    %c0_i32_1 = arith.constant 0 : i32
    return %arg0, %c0_i32, %c0_i32_0 : i32, i32, i32
  }
  func.func @transform_16(%arg0: i32) -> (i32, i32, i32) {
    %c0_i32 = arith.constant 0 : i32
    %c0_i32_0 = arith.constant 0 : i32
    %c0_i32_1 = arith.constant 0 : i32
    return %arg0, %c0_i32, %c0_i32_0 : i32, i32, i32
  }
  func.func @transform_17(%arg0: i32) -> (i32, i32, i32) {
    %c0_i32 = arith.constant 0 : i32
    %c0_i32_0 = arith.constant 0 : i32
    %c0_i32_1 = arith.constant 0 : i32
    return %arg0, %c0_i32, %c0_i32_0 : i32, i32, i32
  }
  func.func @transform_18(%arg0: i32) -> (i32, i32) {
    %c0_i32 = arith.constant 0 : i32
    %c0_i32_0 = arith.constant 0 : i32
    %c0_i32_1 = arith.constant 0 : i32
    return %c0_i32, %c0_i32_0 : i32, i32
  }
  func.func @transform_19(%arg0: i32) -> (i32, i32) {
    %c0_i32 = arith.constant 0 : i32
    %c0_i32_0 = arith.constant 0 : i32
    %c0_i32_1 = arith.constant 0 : i32
    return %c0_i32, %c0_i32_0 : i32, i32
  }
  func.func @transform_20(%arg0: i32) -> (i32, i32) {
    %c0_i32 = arith.constant 0 : i32
    %c0_i32_0 = arith.constant 0 : i32
    %c0_i32_1 = arith.constant 0 : i32
    return %c0_i32, %c0_i32_0 : i32, i32
  }
  func.func @transform_21(%arg0: i32) -> (i32, i32) {
    %c0_i32 = arith.constant 0 : i32
    %c0_i32_0 = arith.constant 0 : i32
    %c0_i32_1 = arith.constant 0 : i32
    return %c0_i32, %c0_i32_0 : i32, i32
  }
  func.func @transform_22(%arg0: i32) -> (i32, i32) {
    %c0_i32 = arith.constant 0 : i32
    %c0_i32_0 = arith.constant 0 : i32
    %c0_i32_1 = arith.constant 0 : i32
    return %c0_i32, %c0_i32_0 : i32, i32
  }
  func.func @transform_23(%arg0: i32) -> (i32, i32) {
    %c0_i32 = arith.constant 0 : i32
    %c0_i32_0 = arith.constant 0 : i32
    %c0_i32_1 = arith.constant 0 : i32
    return %c0_i32, %c0_i32_0 : i32, i32
  }
  func.func @transform_24(%arg0: i32) -> (i32, i32) {
    %c0_i32 = arith.constant 0 : i32
    %c0_i32_0 = arith.constant 0 : i32
    %c0_i32_1 = arith.constant 0 : i32
    return %c0_i32, %c0_i32_0 : i32, i32
  }
}

</mosaic_0001>

<bundles_post_ra>
// kernel: tpu_custom_call.1
= control target key start
LH: loop header
LB: loop body
LE: loop exit
PB: predicated region body
PF: predicated region fallthrough
CT: control target
= control target key end

     0   :  { %s3152_s0 = inlined_call_operand.vmem [shape: f32[8,10], index: 0, kind: input, shape index: {}]   ;;  %s3153_s1 = inlined_call_operand.vmem [shape: f32[24,2], index: 1, kind: input, shape index: {}]   ;;  %s3154_s2 = inlined_call_operand.vmem [shape: f32[2,8], index: 2, kind: input, shape index: {}]   ;;  %s3155_s3 = inlined_call_operand.vmem [shape: bf16[24,8], index: 3, kind: input, shape index: {}]   ;;  %s3156_s4 = inlined_call_operand.vmem [shape: bf16[24,8], index: 4, kind: input, shape index: {}]   ;;  %s3157_s5 = inlined_call_operand.vmem [shape: bf16[8,24], index: 5, kind: input, shape index: {}]   ;;  %s3158_s6 = inlined_call_operand.vmem [shape: f32[10,128], index: 6, kind: input, shape index: {}]   ;;  %s3159_s7 = inlined_call_operand.vmem [shape: f32[1,128], index: 7, kind: input, shape index: {}]   ;;  %s3160_s8 = inlined_call_operand.vmem [shape: f32[2,128], index: 8, kind: input, shape index: {}]   ;;  %s3161_s9 = inlined_call_operand.vmem [shape: f32[1,128], index: 9, kind: input, shape index: {}]   ;;  %s3162_s10 = inlined_call_operand.hbm [shape: bf16[5,128,512], index: 10, kind: input, shape index: {}]   ;;  %s3163_s11 = inlined_call_operand.vmem [shape: f32[5,1,512], index: 11, kind: input, shape index: {}]   ;;  %s3164_s12 = inlined_call_operand.hbm [shape: bf16[5,128,128], index: 12, kind: input, shape index: {}]   ;;  %s3165_s13 = inlined_call_operand.vmem [shape: f32[5,1,128], index: 13, kind: input, shape index: {}]   ;;  %s3166_s14 = inlined_call_operand.vmem [shape: f32[5,1,128], index: 14, kind: input, shape index: {}]   ;;  %s3167_s15 = inlined_call_operand.vmem [shape: f32[5,1,128], index: 15, kind: input, shape index: {}]   ;;  %s3168_s16 = inlined_call_operand.vmem [shape: f32[5,1,128], index: 16, kind: input, shape index: {}]   ;;  %s3169_s17 = inlined_call_operand.vmem [shape: f32[5,1,128], index: 17, kind: input, shape index: {}]   ;;  %s3170_s18 = inlined_call_operand.vmem [shape: f32[8,128], index: 18, kind: input, shape index: {}]   ;;  %s3171_s19 = inlined_call_operand.vmem [shape: f32[1,128], index: 19, kind: input, shape index: {}]   ;;  %s3172_s20 = inlined_call_operand.vmem [shape: f32[128,10], index: 20, kind: input, shape index: {}]   ;;  %s3173_s21 = inlined_call_operand.vmem [shape: f32[1,10], index: 21, kind: input, shape index: {}]   ;;  %s3174_s22 = inlined_call_operand.hbm [shape: f32[8,128], index: 22, kind: output, shape index: {0}]   ;;  %s3175_s23 = inlined_call_operand.hbm [shape: f32[24,128], index: 23, kind: output, shape index: {1}]   ;;  %s3176_s24 = inlined_call_operand.hbm [shape: f32[2,10], index: 24, kind: output, shape index: {2}]  }
   0x1   :  { %3184 = sst [smem:[#allocation28_spill]] %s3152_s0 }
   0x2   :  { %3185 = sst [smem:[#allocation29_spill]] %s3153_s1 }
   0x3   :  { %3186 = sst [smem:[#allocation30_spill]] %s3154_s2 }
   0x4   :  { %3187 = sst [smem:[#allocation31_spill]] %s3155_s3 }
   0x5   :  { %3188 = sst [smem:[#allocation32_spill]] %s3156_s4 }
   0x6   :  { %3189 = sst [smem:[#allocation33_spill]] %s3157_s5 }
   0x7   :  { %3190 = sst [smem:[#allocation34_spill]] %s3158_s6 }
   0x8   :  { %3191 = sst [smem:[#allocation35_spill]] %s3159_s7 }
   0x9   :  { %3192 = sst [smem:[#allocation36_spill]] %s3160_s8 }
   0xa   :  { %3193 = sst [smem:[#allocation37_spill]] %s3162_s10 }
   0xb   :  { %3194 = sst [smem:[#allocation38_spill]] %s3164_s12 }
   0xc   :  { %3195 = sst [smem:[#allocation39_spill]] %s3171_s19 }
   0xd   :  { %3196 = sst [smem:[#allocation40_spill]] %s3173_s21 }
   0xe   :  { %3197 = sst [smem:[#allocation41_spill]] %s3174_s22 }
   0xf   :  { %3198 = sst [smem:[#allocation42_spill]] %s3175_s23 }
  0x10   :  { %3199 = sst [smem:[#allocation43_spill]] %s3176_s24 }
  0x11   :  { %30 = vsyncpa [#allocation7], 0 }
  0x12   :  { %32 = vsyncpa [#allocation7 + $0x1], 0 }
  0x13   :  { %33 = vsyncpa [#allocation10], 0 }
  0x14   :  { %35 = vsyncpa [#allocation10 + $0x1], 0 }
  0x15   :  { %36 = vsyncpa [#allocation8], 0 }
  0x16   :  { %37 = vsyncpa [#allocation13], 0  ;;  %s2663_s5 = smov 0   ;;  %s2665_s26 = smov 0  }
  0x17   :  { %s2667_s27 = smov 0   ;;  %s2669_s28 = smov 0  }
  0x18 LB: > { %3200 = sst [smem:[#allocation25_spill]] %s2523_s27  ;;  %s2682_s6 = sadd.s32 4294967295, %s2527_s28   ;;  %s2527_s28 = sphi %s2669_s28, %s3228_s28   ;;  %s2523_s27 = sphi %s2667_s27, %s3230_s27   ;;  %s2519_s26 = sphi %s2665_s26, %s3232_s26   ;;  %s2515_s5 = sphi %s2663_s5, %s3231_s5  }
  0x19   : > { %s2685_s2 = sadd.s32 1, %s2527_s28   ;;  %s197_s0 = sadd.s32 1, %s2523_s27 }
  0x1a   : > { %3201 = sst [smem:[#allocation26_spill]] %s2685_s2  ;;  %s194_s29 = ssub.s32 %s2527_s28, %s2685_s2 }
  0x1b   : > { %p195_p0 = scmp.eq.s32.totalorder %s194_s29, 0  ;;  %p204_p1 = scmp.ne.s32.totalorder %s2523_s27, %s2519_s26 }
  0x1c   : > { %p205_p2 = scmp.eq.s32.totalorder %s2527_s28, 0  ;;  %p210_p3 = scmp.ne.s32.totalorder %s2519_s26, %s2515_s5 }
  0x1d   : > { %s2695_s7 = scalar_select %p195_p0, %s2523_s27, %s197_s0  }
  0x1e   : > { %p2697_p4 = por %p205_p2, %p204_p1  ;;  %p211_p5 = scmp.eq.s32.totalorder %s2682_s6, 0 }
  0x1f   : > { %3202 = sst [smem:[#allocation27_spill]] %s2695_s7  ;;  %p2256_p6 = scmp.lt.s32.totalorder %s2527_s28, 5 }
  0x20   : > { %p2703_p7 = por %p211_p5, %p210_p3  ;;  %s2708_s25 = sand.u32 1, %s2523_s27  }
  0x21   : > { %s1976_s8 = sshll.u32 %s2708_s25, 8  ;;  %s2187_s4 = sshll.u32 %s2527_s28, 8 }
  0x22   : > { %s3205_s10 = sld [smem:[#allocation37_spill]]  ;;  %s600_s0 = scalar_lea.vmem [#allocation6], %s1976_s8 }
  0x23   : > { %s608_s7 = sshll.u32 %s600_s0, 4  ;;  %p2717_p8 = pnand %p2256_p6, %p2697_p4  ;;  %s609_s7 = int_to_ptr.vmem [resolvable:$true] %s608_s7 }
  0x24   : > { %p1982_p9 = scmp.ge.s32.totalorder %s2527_s28, 1  ;;  %s597_s27 = scalar_lea.sflag [#allocation7], %s2708_s25 }
  0x25   : > { %p2335_p11 = pneg %p2717_p8 }
  0x28   : > { %s605_s29 = scalar_lea.hbm %s3205_s10, %s2187_s4  ;;  %s2338_s4 = scalar_lea.hbm %s3205_s10, 1280 }
  0x29   : > { %s606_s2 = sshll.u32 %s605_s29, 4  ;;  %s607_s2 = int_to_ptr.hbm [resolvable:$true] %s606_s2 }
  0x2a   : > { %s2331_s22 = sshra.s32 %s607_s2, 4  ;;  %s2332_s22 = int_to_ptr.hbm [resolvable:$true] %s2331_s22 }
  0x2b   : > { %s2333_s23 = scalar_lea.hbm %s2332_s22, 256  ;;  %p2339_p0 = scmp.lt.s32.totalorder %s2332_s22, %s3205_s10 }
  0x2c   : > { %p2334_p10 = scmp.ne.s32.totalorder %s2332_s22, %s2333_s23  ;;  %p2340_p1 = scmp.lt.s32.totalorder %s2338_s4, %s2333_s23 }
  0x2e   : > { %p2336_p12 = pnand %p2335_p11, %p2334_p10  ;;  %p2341_p2 = por %p2340_p1, %p2339_p0 }
  0x30   : > { %p2337_p13 = pneg %p2336_p12 }
  0x32   : > { %p2342_p3 = pnand %p2341_p2, %p2337_p13 }
  0x34   : > { %2345 = shalt.err (!%p2342_p3)
}
  0x35   : > { %s2529_s29 = smov 256   ;;  %s2530_s0 = smov 16  }
  0x36   : > { %2252 = dma.hbm_to_vmem [thread:$0]  (!%p2717_p8), %s607_s2, 4096, %s609_s7, %s597_s27, %s2529_s29, %s2529_s29, %s2530_s0  }
  0x37   : > { %p675_p4 = scmp.lt.s32.totalorder %s2527_s28, 6  ;;  %s1979_s8 = sshll.u32 %s2708_s25, 6 }
  0x38   : > { %s2188_s30 = sshll.u32 %s2527_s28, 6  ;;  %s3208_s12 = sld [smem:[#allocation38_spill]] }
  0x39   : > { %p2741_p5 = pnand %p1982_p9, %p675_p4  ;;  %s629_s5 = scalar_lea.vmem [#allocation9], %s1979_s8 }
  0x3a   : > { %s637_s10 = sshll.u32 %s629_s5, 4  ;;  %s626_s19 = scalar_lea.sflag [#allocation10], %s2708_s25  ;;  %s638_s10 = int_to_ptr.vmem [resolvable:$true] %s637_s10 }
  0x3e   : > { %s634_s1 = scalar_lea.hbm %s3208_s12, %s2188_s30  ;;  %s2368_s29 = scalar_lea.hbm %s3208_s12, 320 }
  0x3f   : > { %s635_s21 = sshll.u32 %s634_s1, 4  ;;  %s636_s21 = int_to_ptr.hbm [resolvable:$true] %s635_s21 }
  0x40   : > { %s2361_s27 = sshra.s32 %s636_s21, 4  ;;  %s2362_s27 = int_to_ptr.hbm [resolvable:$true] %s2361_s27 }
  0x41   : > { %s2363_s2 = scalar_lea.hbm %s2362_s27, 64  ;;  %p2369_p12 = scmp.lt.s32.totalorder %s2362_s27, %s3208_s12 }
  0x42   : > { %p2364_p6 = scmp.ne.s32.totalorder %s2362_s27, %s2363_s2  ;;  %p2370_p13 = scmp.lt.s32.totalorder %s2368_s29, %s2363_s2 }
  0x44   : > { %p2366_p9 = pnand %p2364_p6, %p2335_p11  ;;  %p2371_p0 = por %p2370_p13, %p2369_p12 }
  0x46   : > { %p2367_p10 = pneg %p2366_p9 }
  0x48   : > { %p2372_p1 = pnand %p2371_p0, %p2367_p10 }
  0x4a   : > { %2375 = shalt.err (!%p2372_p1)
}
  0x4b   : > { %s2531_s25 = smov 64   ;;  %s2532_s8 = smov 4  }
  0x4c   : > { %2255 = dma.hbm_to_vmem [thread:$0]  (!%p2717_p8), %s636_s21, 1024, %s638_s10, %s626_s19, %s2531_s25, %s2531_s25, %s2532_s8  }
  0x4d   : > { %679 = sbr.rel (%p2741_p5) target bundleno = 1104 (0x450), region = 96  ;;  %s681_s23 = sand.u32 (!%p2741_p5), 1, %s2519_s26  }
  0x4e   : > { %s1983_s4 = sshll.u32 (!%p2741_p5), %s681_s23, 8  ;;  %s682_s1 = scalar_lea.sflag (!%p2741_p5), [#allocation7], %s681_s23 }
  0x4f   : > { %s2763_s5 = scalar_lea.vmem (!%p2741_p5), [#allocation6], %s1983_s4 }
  0x52   : > { %2492 = dma.done.wait (%p2703_p7), %s682_s1, 4096  }
  0x53   : > { %2494 = vsyncadd (%p2703_p7), %s682_s1, 4294963200  ;;  %s1984_s27 = sshll.u32 %s681_s23, 6  ;;  %s692_s2 = scalar_lea.sflag [#allocation10], %s681_s23 }
  0x54   : > { %s2769_s24 = scalar_lea.vmem [#allocation9], %s1984_s27 }
  0x55   : > { %2496 = dma.done.wait (%p2703_p7), %s692_s2, 1024  }
  0x56   : > { %2498 = vsyncadd (%p2703_p7), %s692_s2, 4294966272  ;;  %p774_p8 = scmp.lt.s32.totalorder %s2682_s6, 4  ;;  %p1986_p7 = scmp.ne.s32.totalorder %s2682_s6, 0 }
  0x57   : > { %s3209_s29 = sld [smem:[#allocation31_spill]] (!%p1986_p7) }
  0x58   : > { %s2777_s10 = scalar_select %p774_p8, %s2682_s6, 4 }
  0x59   : > { %797 = sbr.rel (%p1986_p7) target bundleno = 260 (0x104), region = 108 }
  0x5a   : > { %s1985_s19 = sshll.u32 %s2777_s10, 2  ;;  %s780_s28 = scalar_lea.vmem %s3165_s13, %s2777_s10 }
  0x5b   : > { %s2787_s3 = scalar_lea.vmem %s3163_s11, %s1985_s19  ;;  %s789_s2 = scalar_lea.vmem %s3168_s16, %s2777_s10 }
  0x5e   : > { %v810_v0 = vld [vmem:[%s3209_s29] sm:$0xff]  ;;  %v1987_v1 = vld [vmem:[%s3209_s29 + $0x8] sm:$0xf] }
  0x5f   : > { %811 = vst [vmem:[#allocation2] sm:$0xff] %v810_v0 }
  0x60   : > { %823 = vst [vmem:[#allocation2 + $0x8] sm:$0xf] %v1987_v1 }
  0x61   : > { %827 = vsyncadd [#allocation5], 192  ;;  %s3210_s1 = sld [smem:[#allocation32_spill]] }
  0x67   : > { %v841_v2 = vld [vmem:[%s3210_s1] sm:$0xff]  ;;  %v1988_v3 = vld [vmem:[%s3210_s1 + $0x8] sm:$0xf] }
  0x68   : > { %842 = vst [vmem:[#allocation3] sm:$0xff] %v841_v2 }
  0x69   : > { %854 = vst [vmem:[#allocation3 + $0x8] sm:$0xf] %v1988_v3 }
  0x6a   : > { %858 = vsyncadd [#allocation5 + $0x1], 192  ;;  %s3211_s7 = sld [smem:[#allocation33_spill]]  ;;  %vm905_vm0 = vcmask 1041408   ;;  %vm938_vm1 = vcmask 15360  }
  0x6b   : > { %s3212_s4 = sld [smem:[#allocation36_spill]] }
  0x6c   : > { %s3213_s23 = sld [smem:[#allocation29_spill]] }
  0x70   : > { %v874_v4 = vld [vmem:[%s3211_s7] sm:$0xf] }
  0x71   : > { %875 = vst [vmem:[#allocation4] sm:$0xf] %v874_v4  ;;  %v933_v5 = vld [vmem:[%s3212_s4] sm:$0x3] }
  0x72   : > { %v931_v6 = vld [vmem:[%s3213_s23 + $0x8] sm:$0xff]  ;;  %v932_v7 = vld [vmem:[%s3213_s23 + $0x10] sm:$0xff]  ;;  %2231 = vmatpush.msk.msra.mxu2 %vm905_vm0, %v933_v5  ;;  %2232 = vmatpush.msk.msra.mxu3 %vm905_vm0, %v933_v5 }
  0x73   : > { %893 = vsyncadd [#allocation5 + $0x2], 64  ;;  %s3214_s7 = sld [smem:[#allocation34_spill]]  ;;  %1993 = vmatmul.msk.f32.vlgmr.msra.gmra.mxu2 %vm938_vm1, %v931_v6  ;;  %1994 = vmatmul.msk.f32.vlgmr.msra.gmra.mxu3 %vm938_vm1, %v932_v7  ;;  %v930_v10 = vld [vmem:[%s3213_s23] sm:$0xff]  ;;  %vm901_vm2 = vcmask 80896  }
  0x74   : > { %1991 = vmatpush.msk.msra.mxu1 %vm905_vm0, %v933_v5  ;;  %s3215_s27 = sld [smem:[#allocation28_spill]]  ;;  %v2305_v12 = vld [vmem:[%s3161_s9] ss:$0 sm:$0xff] }
  0x75   : > { %1992 = vmatmul.msk.f32.vlgmr.msra.gmra.mxu1 %vm938_vm1, %v930_v10  ;;  %s3216_s22 = sld [smem:[#allocation35_spill]] }
  0x79   : > { %v896_v8 = vld [vmem:[%s3214_s7 + $0x8] sm:$0x3]  ;;  %v895_v9 = vld [vmem:[%s3214_s7] sm:$0xff] }
  0x7a   : > { %1989 = vmatpush.msk.msra.mxu0 %vm905_vm0, %v896_v8  ;;  %v894_v11 = vld [vmem:[%s3215_s27] sm:$0xff] }
  0x7b   : > { %v2304_v13 = vld [vmem:[%s3216_s22] ss:$0 sm:$0xff] }
  0x7c   : > { %924 = vmatpush.msra.mxu0 %v895_v9 }
  0x7d   : > { %1990 = vmatmul.msk.f32.vlgmr.msra.gmra.mxu0 %vm901_vm2, %v894_v11 }
  0xf2   : > { %v968_v14 = vpop.f32.mrf.mxu1 }
  0xf3   : > { %v969_v15 = vadd.f32 %v2305_v12, %v968_v14 }
  0xf5   : > { %977 = vst [vmem:[#allocation12] sm:$0xff] %v969_v15 }
  0xf6   : > { %v971_v18 = vpop.f32.mrf.mxu2  ;;  %v974_v19 = vpop.f32.mrf.mxu3 }
  0xf7   : > { %v972_v20 = vadd.f32 %v2305_v12, %v971_v18  ;;  %v975_v21 = vadd.f32 %v2305_v12, %v974_v19 }
  0xf9   : > { %978 = vst [vmem:[#allocation12 + $0x8] sm:$0xff] %v972_v20 }
  0xfa   : > { %v926_v16 = vpop.f32.mrf.mxu0  ;;  %979 = vst [vmem:[#allocation12 + $0x10] sm:$0xff] %v975_v21 }
  0xfb   : > { %v927_v17 = vadd.f32 %v2304_v13, %v926_v16 }
  0xfd   : > { %929 = vst [vmem:[#allocation11] sm:$0xff] %v927_v17 }
  0xfe   : > { %2499 = dma.done.wait [#allocation5], 192 }
  0xff   : > { %2500 = vsyncadd [#allocation5], 4294967104 }
 0x100   : > { %2501 = dma.done.wait [#allocation5 + $0x1], 192 }
 0x101   : > { %2502 = vsyncadd [#allocation5 + $0x1], 4294967104 }
 0x102   : > { %2503 = dma.done.wait [#allocation5 + $0x2], 64 }
 0x103   : > { %2504 = vsyncadd [#allocation5 + $0x2], 4294967232 }
 0x104 PF: > { %v2117_v22 = vld [vmem:[%s2763_s5 + $0xe8] sm:$0xf]  ;;  %v2220_v23 = vld [vmem:[%s2763_s5 + $0xf4] sm:$0xf0]  ;;  %v2218_v24 = vld [vmem:[%s2763_s5 + $0xec] sm:$0xf]  ;;  %s3219_s30 = scalar_lea.vmem %s3169_s17, %s2777_s10  ;;  %s3220_s12 = scalar_lea.vmem %s3166_s14, %s2777_s10 }
 0x105   : > { %v2118_v25 = vor.u32 %v2220_v23, %v2117_v22  ;;  %v2119_v26 = vld [vmem:[%s2763_s5 + $0xf8] sm:$0xf0]  ;;  %v2101_v27 = vld [vmem:[%s2763_s5 + $0xc8] sm:$0xf]  ;;  %v2216_v28 = vld [vmem:[%s2763_s5 + $0xd4] sm:$0xf0]  ;;  %s3221_s19 = scalar_lea.vmem %s3167_s15, %s2777_s10 }
 0x106   : > { %v2122_v29 = vor.u32 %v2218_v24, %v2119_v26  ;;  %v2214_v30 = vld [vmem:[%s2763_s5 + $0xcc] sm:$0xf]  ;;  %v2103_v31 = vld [vmem:[%s2763_s5 + $0xd8] sm:$0xf0]  ;;  %v2102_v32 = vor.u32 %v2216_v28, %v2101_v27  ;;  %v2085_v34 = vld [vmem:[%s2763_s5 + $0xa8] sm:$0xf] }
 0x107   : > { %1223 = vmatpush.bf16.msra.mxu2 %v2118_v25  ;;  %v2106_v33 = vor.u32 %v2214_v30, %v2103_v31  ;;  %v2212_v35 = vld [vmem:[%s2763_s5 + $0xb4] sm:$0xf0]  ;;  %v2210_v36 = vld [vmem:[%s2763_s5 + $0xac] sm:$0xf]  ;;  %v2087_v37 = vld [vmem:[%s2763_s5 + $0xb8] sm:$0xf0] }
 0x108   : > { %1236 = vmatpush.bf16.msra.mxu3 %v2122_v29  ;;  %v2086_v38 = vor.u32 %v2212_v35, %v2085_v34  ;;  %v2090_v39 = vor.u32 %v2210_v36, %v2087_v37  ;;  %v2069_v40 = vld [vmem:[%s2763_s5 + $0x88] sm:$0xf]  ;;  %v2208_v41 = vld [vmem:[%s2763_s5 + $0x94] sm:$0xf0]  ;;  %v2206_v42 = vld [vmem:[%s2763_s5 + $0x8c] sm:$0xf] }
 0x109   : > { %v2071_v43 = vld [vmem:[%s2763_s5 + $0x98] sm:$0xf0]  ;;  %v2070_v44 = vor.u32 %v2208_v41, %v2069_v40  ;;  %v2217_v45 = vld [vmem:[%s2763_s5 + $0xe4] sm:$0xf]  ;;  %v2111_v46 = vld [vmem:[%s2763_s5 + $0xf0] sm:$0xf0] }
 0x10a   : > { %v2213_v47 = vld [vmem:[%s2763_s5 + $0xc4] sm:$0xf]  ;;  %v2074_v48 = vor.u32 %v2206_v42, %v2071_v43  ;;  %v2053_v49 = vld [vmem:[%s2763_s5 + $0x68] sm:$0xf]  ;;  %v2204_v50 = vld [vmem:[%s2763_s5 + $0x74] sm:$0xf0]  ;;  %v2114_v51 = vor.u32 %v2217_v45, %v2111_v46 }
 0x10b   : > { %1224 = vmatpush.bf16.msra.mxu2 %v2102_v32  ;;  %v2095_v52 = vld [vmem:[%s2763_s5 + $0xd0] sm:$0xf0]  ;;  %v2202_v53 = vld [vmem:[%s2763_s5 + $0x6c] sm:$0xf]  ;;  %v2055_v54 = vld [vmem:[%s2763_s5 + $0x78] sm:$0xf0]  ;;  %v2054_v57 = vor.u32 %v2204_v50, %v2053_v49 }
 0x10c   : > { %1237 = vmatpush.bf16.msra.mxu3 %v2106_v33  ;;  %v2037_v55 = vld [vmem:[%s2763_s5 + $0x48] sm:$0xf]  ;;  %1210 = vmatpush.bf16.msra.mxu1 %v2114_v51  ;;  %v2098_v56 = vor.u32 %v2213_v47, %v2095_v52  ;;  %v2200_v58 = vld [vmem:[%s2763_s5 + $0x54] sm:$0xf0]  ;;  %v2209_v59 = vld [vmem:[%s2763_s5 + $0xa4] sm:$0xf]  ;;  %v2058_v61 = vor.u32 %v2202_v53, %v2055_v54 }
 0x10d   : > { %v2079_v60 = vld [vmem:[%s2763_s5 + $0xb0] sm:$0xf0]  ;;  %v2198_v62 = vld [vmem:[%s2763_s5 + $0x4c] sm:$0xf]  ;;  %v2109_v63 = vld [vmem:[%s2763_s5 + $0xe0] sm:$0xf]  ;;  %v2038_v6 = vor.u32 %v2200_v58, %v2037_v55 }
 0x10e   : > { %v2219_v0 = vld [vmem:[%s2763_s5 + $0xec] sm:$0xf0]  ;;  %v2039_v1 = vld [vmem:[%s2763_s5 + $0x58] sm:$0xf0]  ;;  %v2093_v3 = vld [vmem:[%s2763_s5 + $0xc0] sm:$0xf]  ;;  %v2082_v5 = vor.u32 %v2209_v59, %v2079_v60 }
 0x10f   : > { %1225 = vmatpush.bf16.msra.mxu2 %v2086_v38  ;;  %v2110_v2 = vor.u32 %v2219_v0, %v2109_v63  ;;  %v2215_v4 = vld [vmem:[%s2763_s5 + $0xcc] sm:$0xf0]  ;;  %v2021_v7 = vld [vmem:[%s2763_s5 + $0x28] sm:$0xf]  ;;  %v2205_v8 = vld [vmem:[%s2763_s5 + $0x84] sm:$0xf]  ;;  %v2042_v11 = vor.u32 %v2198_v62, %v2039_v1 }
 0x110   : > { %1238 = vmatpush.bf16.msra.mxu3 %v2090_v39  ;;  %1211 = vmatpush.bf16.msra.mxu1 %v2098_v56  ;;  %v2063_v9 = vld [vmem:[%s2763_s5 + $0x90] sm:$0xf0]  ;;  %v2094_v10 = vor.u32 %v2215_v4, %v2093_v3  ;;  %v2196_v12 = vld [vmem:[%s2763_s5 + $0x34] sm:$0xf0]  ;;  %v2077_v13 = vld [vmem:[%s2763_s5 + $0xa0] sm:$0xf] }
 0x111   : > { %1197 = vmatpush.bf16.msra.mxu0 %v2110_v2  ;;  %v2211_v14 = vld [vmem:[%s2763_s5 + $0xac] sm:$0xf0]  ;;  %v2194_v15 = vld [vmem:[%s2763_s5 + $0x2c] sm:$0xf]  ;;  %v2023_v16 = vld [vmem:[%s2763_s5 + $0x38] sm:$0xf0]  ;;  %v2066_v19 = vor.u32 %v2205_v8, %v2063_v9  ;;  %v2022_v22 = vor.u32 %v2196_v12, %v2021_v7 }
 0x112   : > { %v2005_v17 = vld [vmem:[%s2763_s5 + $0x8] sm:$0xf]  ;;  %v2192_v18 = vld [vmem:[%s2763_s5 + $0x14] sm:$0xf0]  ;;  %v2201_v20 = vld [vmem:[%s2763_s5 + $0x64] sm:$0xf]  ;;  %v2078_v23 = vor.u32 %v2211_v14, %v2077_v13  ;;  %v2026_v24 = vor.u32 %v2194_v15, %v2023_v16 }
 0x113   : > { %1226 = vmatpush.bf16.msra.mxu2 %v2070_v44  ;;  %v2047_v21 = vld [vmem:[%s2763_s5 + $0x70] sm:$0xf0]  ;;  %v2061_v25 = vld [vmem:[%s2763_s5 + $0x80] sm:$0xf]  ;;  %v2207_v26 = vld [vmem:[%s2763_s5 + $0x8c] sm:$0xf0]  ;;  %v2006_v30 = vor.u32 %v2192_v18, %v2005_v17 }
 0x114   : > { %1239 = vmatpush.bf16.msra.mxu3 %v2074_v48  ;;  %1212 = vmatpush.bf16.msra.mxu1 %v2082_v5  ;;  %v2190_v27 = vld [vmem:[%s2763_s5 + $0xc] sm:$0xf]  ;;  %v2007_v28 = vld [vmem:[%s2763_s5 + $0x18] sm:$0xf0]  ;;  %v2050_v29 = vor.u32 %v2201_v20, %v2047_v21  ;;  %v2898_v31 = vld [vmem:[#allocation11] sm:$0xff]  ;;  %v2062_v34 = vor.u32 %v2207_v26, %v2061_v25  ;;  %vm1357_vm3 = vcmask 1043456  }
 0x115   : > { %1198 = vmatpush.bf16.msra.mxu0 %v2094_v10  ;;  %v2197_v32 = vld [vmem:[%s2763_s5 + $0x44] sm:$0xf]  ;;  %v2031_v33 = vld [vmem:[%s2763_s5 + $0x50] sm:$0xf0]  ;;  %v2010_v35 = vor.u32 %v2190_v27, %v2007_v28  ;;  %v2045_v36 = vld [vmem:[%s2763_s5 + $0x60] sm:$0xf]  ;;  %v994_v38 = vpack.c.bf16 %v2898_v31, %v2898_v31 }
 0x116   : > { %v2203_v37 = vld [vmem:[%s2763_s5 + $0x6c] sm:$0xf0]  ;;  %v2034_v39 = vor.u32 %v2197_v32, %v2031_v33  ;;  %v2193_v40 = vld [vmem:[%s2763_s5 + $0x24] sm:$0xf]  ;;  %v2015_v41 = vld [vmem:[%s2763_s5 + $0x30] sm:$0xf0] }
 0x117   : > { %1227 = vmatpush.bf16.msra.mxu2 %v2054_v57  ;;  %v2046_v42 = vor.u32 %v2203_v37, %v2045_v36  ;;  %v2029_v43 = vld [vmem:[%s2763_s5 + $0x40] sm:$0xf]  ;;  %v2199_v44 = vld [vmem:[%s2763_s5 + $0x4c] sm:$0xf0]  ;;  %v2018_v45 = vor.u32 %v2193_v40, %v2015_v41  ;;  %v2189_v46 = vld [vmem:[%s2763_s5 + $0x4] sm:$0xf] }
 0x118   : > { %1240 = vmatpush.bf16.msra.mxu3 %v2058_v61  ;;  %1213 = vmatpush.bf16.msra.mxu1 %v2066_v19  ;;  %v1999_v47 = vld [vmem:[%s2763_s5 + $0x10] sm:$0xf0]  ;;  %v2030_v48 = vor.u32 %v2199_v44, %v2029_v43  ;;  %v2013_v49 = vld [vmem:[%s2763_s5 + $0x20] sm:$0xf]  ;;  %v2195_v50 = vld [vmem:[%s2763_s5 + $0x2c] sm:$0xf0] }
 0x119   : > { %1199 = vmatpush.bf16.msra.mxu0 %v2078_v23  ;;  %v2002_v51 = vor.u32 %v2189_v46, %v1999_v47  ;;  %v2014_v52 = vor.u32 %v2195_v50, %v2013_v49  ;;  %v1997_v53 = vld [vmem:[%s2763_s5] sm:$0xf]  ;;  %v2191_v54 = vld [vmem:[%s2763_s5 + $0xc] sm:$0xf0]  ;;  %v2228_v56 = vld [vmem:[%s2769_s24 + $0x38] sm:$0xff]  ;;  %vm1350_vm4 = vcmask 64512  }
 0x11a   : > { %v1998_v55 = vor.u32 %v2191_v54, %v1997_v53  ;;  %v2227_v57 = vld [vmem:[%s2769_s24 + $0x30] sm:$0xff]  ;;  %v2226_v58 = vld [vmem:[%s2769_s24 + $0x28] sm:$0xff]  ;;  %v2225_v59 = vld [vmem:[%s2769_s24 + $0x20] sm:$0xff]  ;;  %vm1510_vm2 = vcmask 195584   ;;  %p2174_p11 = scmp.ne.s32.totalorder %s2682_s6, 4 }
 0x11b   : > { %1228 = vmatpush.bf16.msra.mxu2 %v2038_v6  ;;  %v2224_v60 = vld [vmem:[%s2769_s24 + $0x18] sm:$0xff]  ;;  %v2223_v61 = vld [vmem:[%s2769_s24 + $0x10] sm:$0xff]  ;;  %v2222_v62 = vld [vmem:[%s2769_s24 + $0x8] sm:$0xff]  ;;  %s3223_s22 = sld [smem:[#allocation39_spill]] (!%p2174_p11) }
 0x11c   : > { %1241 = vmatpush.bf16.msra.mxu3 %v2042_v11  ;;  %1214 = vmatpush.bf16.msra.mxu1 %v2050_v29  ;;  %v2221_v63 = vld [vmem:[%s2769_s24] sm:$0xff]  ;;  %v2924_v0 = vld [vmem:[#allocation12] sm:$0xff]  ;;  %v2926_v1 = vld [vmem:[#allocation12 + $0x8] sm:$0xff] }
 0x11d   : > { %1200 = vmatpush.bf16.msra.mxu0 %v2062_v34  ;;  %v1249_v2 = vpack.c.bf16 %v2926_v1, %v2924_v0  ;;  %v2930_v3 = vld [vmem:[#allocation12 + $0x10] sm:$0xff]  ;;  %v2935_v5 = vld [vmem:[%s2787_s3] sm:$0xf]  ;;  %v2230_v19 = vld [vmem:[#allocation3] sm:$0xff] }
 0x11e   : > { %v1250_v4 = vpack.c.bf16 %v2930_v3, %v2930_v3  ;;  %v1031_v6 = vperm.slane %v2935_v5, 2  ;;  %v1032_v7 = vperm.slane %v2935_v5, 3  ;;  %v1030_v12 = vperm.slane %v2935_v5, 1  ;;  %v2229_v16 = vld [vmem:[#allocation2] sm:$0xff]  ;;  %v1339_v27 = vld [vmem:[#allocation2 + $0x8] sm:$0xf] }
 0x11f   : > { %1229 = vmatpush.bf16.msra.mxu2 %v2022_v22  ;;  %v1402_v28 = vld [vmem:[#allocation3 + $0x8] sm:$0xf]  ;;  %v1347_v29 = vunpack.c.l.b16 %v1339_v27 }
 0x120   : > { %1242 = vmatpush.bf16.msra.mxu3 %v2026_v24  ;;  %1215 = vmatpush.bf16.msra.mxu1 %v2034_v39  ;;  %v2306_v39 = vld [vmem:[%s780_s28] ss:$0 sm:$0xff]  ;;  %s3222_s28 = sld [smem:[#allocation30_spill]] (!%p2174_p11) }
 0x121   : > { %1201 = vmatpush.bf16.msra.mxu0 %v2046_v42  ;;  %v1349_v33 = vpack.c.b16 %v1347_v29, %v1347_v29 }
 0x123   : > { %1230 = vmatpush.bf16.msra.mxu2 %v2006_v30  ;;  %v1409_v30 = vunpack.c.l.b16 %v1402_v28 }
 0x124   : > { %1243 = vmatpush.bf16.msra.mxu3 %v2010_v35  ;;  %1216 = vmatpush.bf16.msra.mxu1 %v2018_v45 }
 0x125   : > { %1202 = vmatpush.bf16.msra.mxu0 %v2030_v48  ;;  %v1411_v34 = vpack.c.b16 %v1409_v30, %v1409_v30 }
 0x126   : > { %1231 = vmatmul.bf16.vlgmr.msra.gmra.mxu2 %v994_v38 }
 0x127   : > { %1244 = vmatmul.bf16.vlgmr.msra.gmra.mxu3 %v994_v38 }
 0x128   : > { %1217 = vmatpush.bf16.msra.mxu1 %v2002_v51 }
 0x129   : > { %1203 = vmatpush.bf16.msra.mxu0 %v2014_v52 }
 0x12b   : > { %1218 = vmatmul.bf16.vlgmr.msra.gmra.mxu1 %v994_v38 }
 0x12d   : > { %1204 = vmatpush.bf16.msra.mxu0 %v1998_v55 }
 0x130   : > { %1205 = vmatmul.bf16.vlgmr.msra.gmra.mxu0 %v994_v38 }
 0x131   : > { %1319 = vmatpush.bf16.msrb.mxu0 %v2228_v56 }
 0x135   : > { %1320 = vmatpush.bf16.msrb.mxu0 %v2227_v57 }
 0x139   : > { %1321 = vmatpush.bf16.msrb.mxu0 %v2226_v58 }
 0x13d   : > { %1322 = vmatpush.bf16.msrb.mxu0 %v2225_v59 }
 0x141   : > { %1323 = vmatpush.bf16.msrb.mxu0 %v2224_v60 }
 0x145   : > { %1324 = vmatpush.bf16.msrb.mxu0 %v2223_v61 }
 0x149   : > { %1325 = vmatpush.bf16.msrb.mxu0 %v2222_v62 }
 0x14d   : > { %1326 = vmatpush.bf16.msrb.mxu0 %v2221_v63 }
 0x150   : > { %1327 = vmatmul.bf16.vlgmr.msrb.gmra.mxu0 %v1249_v2 }
 0x160   : > { %1332 = vmatmul.bf16.gmra.mxu0 %v1250_v4 }
 0x1a8   : > { %v1219_v17 = vpop.f32.mrf.mxu1 }
 0x1a9   : > { %v1232_v8 = vpop.f32.mrf.mxu2  ;;  %v1220_v20 = vadd.f32 %v1219_v17, %v1030_v12 }
 0x1aa   : > { %v1233_v9 = vadd.f32 %v1232_v8, %v1031_v6  ;;  %v1245_v10 = vpop.f32.mrf.mxu3 }
 0x1ab   : > { %v1246_v11 = vadd.f32 %v1245_v10, %v1032_v7  ;;  %v1340_v22 = vpack.c.bf16 %v1220_v20, %v1220_v20 }
 0x1ac   : > { %v1341_v13 = vpack.c.bf16 %v1233_v9, %v1233_v9 }
 0x1ad   : > { %v1403_v14 = vpack.c.bf16 %v1246_v11, %v1246_v11  ;;  %v1359_v24 = vsel %vm1357_vm3, %v1340_v22, 0  ;;  %v2945_v25 = vpop.f32.mrf.mxu0 }
 0x1ae   : > { %v1362_v15 = vsel %vm1357_vm3, %v1341_v13, 0  ;;  %1371 = vmatpush.bf16.msrb.mxu1 %v1359_v24 }
 0x1af   : > { %1389 = vmatpush.bf16.msrb.mxu2 %v1362_v15  ;;  %v1419_v18 = vsel %vm1357_vm3, %v1403_v14, 0 }
 0x1b0   : > { %1428 = vmatpush.bf16.msrb.mxu3 %v1419_v18  ;;  %v1221_v26 = vpop.f32.mrf.mxu1 }
 0x1b1   : > { %v1234_v21 = vpop.f32.mrf.mxu2  ;;  %2159 = vmatmul.msk.bf16.vlgmr.msrb.gmra.mxu1 %vm1350_vm4, %v2229_v16 }
 0x1b2   : > { %v1247_v23 = vpop.f32.mrf.mxu3  ;;  %2161 = vmatmul.msk.bf16.vlgmr.msrb.gmra.mxu2 %vm1350_vm4, %v2229_v16 }
 0x1b3   : > { %2167 = vmatmul.msk.bf16.vlgmr.msrb.gmra.mxu3 %vm1350_vm4, %v2230_v19 }
 0x1b5   : > { %v1208_v32 = vpop.f32.mrf.mxu0 }
 0x1c1   : > { %2160 = vmatmul.msk.bf16.gmra.mxu1 %vm1350_vm4, %v1349_v33 }
 0x1c2   : > { %2162 = vmatmul.msk.bf16.gmra.mxu2 %vm1350_vm4, %v1349_v33 }
 0x1c3   : > { %2168 = vmatmul.msk.bf16.gmra.mxu3 %vm1350_vm4, %v1411_v34 }
 0x1cd   : > { %v1328_v35 = vpop.f32.mrf.mxu0 }
 0x1ce   : > { %v1329_v40 = vadd.f32 %v2306_v39, %v1328_v35 }
 0x1d5   : > { %v1330_v36 = vpop.f32.mrf.mxu0 }
 0x1d6   : > { %v1331_v47 = vadd.f32 %v2306_v39, %v1330_v36 }
 0x1dd   : > { %v1333_v37 = vpop.f32.mrf.mxu0 }
 0x1de   : > { %v1334_v53 = vadd.f32 %v2306_v39, %v1333_v37 }
 0x1e5   : > { %v1335_v38 = vpop.f32.mrf.mxu0 }
 0x22e   : > { %v2956_v44 = vpop.f32.mrf.mxu1 }
 0x235   : > { %v1391_v41 = vpop.f32.mrf.mxu2 }
 0x236   : > { %v1439_v42 = vadd.f32 %v1391_v41, %v1329_v40  ;;  %v1430_v43 = vpop.f32.mrf.mxu3  ;;  %v2961_v51 = vpop.f32.mrf.mxu1 }
 0x238   : > { %v2958_v45 = vadd.f32 %v1439_v42, %v1430_v43 }
 0x23a   : > { %v2169_v46 = vmul.f32 -1.442695, %v2958_v45  ;;  %v1614_v62 = vmul.f32 %v2958_v45, %v2958_v45 }
 0x23c   : > { %2311 = vpow2.f32 %v2169_v46 }
 0x23d   : > { %v1393_v48 = vpop.f32.mrf.mxu2 }
 0x23e   : > { %v1440_v49 = vadd.f32 %v1393_v48, %v1331_v47  ;;  %v1432_v50 = vpop.f32.mrf.mxu3  ;;  %v2970_v61 = vpop.f32.mrf.mxu1 }
 0x240   : > { %v2963_v52 = vadd.f32 %v1440_v49, %v1432_v50 }
 0x242   : > { %v2170_v54 = vmul.f32 -1.442695, %v2963_v52  ;;  %v2312_v55 = vpop.eup %2311  ;;  %v1615_v57 = vmul.f32 %v2963_v52, %v2963_v52  ;;  %v1606_v63 = vadd.f32 %v2963_v52, %v2958_v45 }
 0x243   : > { %v2968_v60 = vadd.f32 1.0, %v2312_v55 }
 0x244   : > { %2313 = vpow2.f32 %v2170_v54  ;;  %v1617_v6 = vadd.f32 %v1615_v57, %v1614_v62 }
 0x245   : > { %v1396_v56 = vpop.f32.mrf.mxu2  ;;  %2315 = vrcp.f32 %v2968_v60  ;;  %vm1462_vm11 = vweird.f32 %v2968_v60 }
 0x246   : > { %v1441_v58 = vadd.f32 %v1396_v56, %v1334_v53  ;;  %v1435_v59 = vpop.f32.mrf.mxu3  ;;  %v1380_v17 = vpop.f32.mrf.mxu1 }
 0x248   : > { %v2976_v2 = vadd.f32 %v1441_v58, %v1435_v59  ;;  %v1468_v58 = vand.u32 2147483648, %v2968_v60 }
 0x24a   : > { %v2314_v4 = vpop.eup %2313  ;;  %v2171_v7 = vmul.f32 -1.442695, %v2976_v2  ;;  %v1607_v8 = vadd.f32 %v1606_v63, %v2976_v2  ;;  %v1616_v9 = vmul.f32 %v2976_v2, %v2976_v2  ;;  %v1466_v63 = vand.u32 2147483647, %v2968_v60 }
 0x24b   : > { %v2983_v10 = vadd.f32 1.0, %v2314_v4  ;;  %v2986_v20 = vpop.eup %2315 }
 0x24c   : > { %2317 = vpow2.f32 %v2171_v7  ;;  %v1608_v11 = vrot.slane %v1607_v8, 4  ;;  %v1618_v12 = vadd.f32 %v1617_v6, %v1616_v9  ;;  %v1458_v30 = vmul.f32 %v2986_v20, %v2968_v60 }
 0x24d   : > { %2319 = vrcp.f32 %v2983_v10  ;;  %v1398_v13 = vpop.f32.mrf.mxu2  ;;  %v1483_v50 = vand.u32 2147483648, %v2983_v10  ;;  %vm1463_vm7 = vweird.f32 %v2986_v20  ;;  %vm1477_vm8 = vweird.f32 %v2983_v10 }
 0x24e   : > { %v1609_v14 = vadd.f32 %v1608_v11, %v1607_v8  ;;  %v1619_v15 = vrot.slane %v1618_v12, 4  ;;  %v1437_v16 = vpop.f32.mrf.mxu3  ;;  %v1459_v37 = vsub.f32 1.0, %v1458_v30  ;;  %v1481_v57 = vand.u32 2147483647, %v2983_v10  ;;  %vm1464_vm13 = vmor %vm1462_vm11, %vm1463_vm7 }
 0x24f   : > { %v1484_v7 = vor.u32 1.1754944e-38, %v1483_v50  ;;  %vm1467_vm0 = vcmp.eq.f32.partialorder %v1466_v63, 8.507059e+37 }
 0x250   : > { %v1610_v18 = vrot.slane %v1609_v14, 2  ;;  %v1620_v19 = vadd.f32 %v1619_v15, %v1618_v12  ;;  %v1460_v46 = vmul.f32 %v2986_v20, %v1459_v37  ;;  %vm1482_vm15 = vcmp.eq.f32.partialorder %v1481_v57, 8.507059e+37 }
 0x251   : > { %v1469_v12 = vor.u32 1.1754944e-38, %v1468_v58 }
 0x252   : > { %v2318_v21 = vpop.eup %2317  ;;  %v1611_v22 = vadd.f32 %v1610_v18, %v1609_v14  ;;  %v1621_v23 = vrot.slane %v1620_v19, 2  ;;  %v1461_v56 = vadd.f32 %v2986_v20, %v1460_v46 }
 0x253   : > { %v2320_v24 = vpop.eup %2319  ;;  %v1456_v26 = vadd.f32 1.0, %v2318_v21 }
 0x254   : > { %v1612_v27 = vrot.slane %v1611_v22, 1  ;;  %v1622_v28 = vadd.f32 %v1621_v23, %v1620_v19  ;;  %v1473_v29 = vmul.f32 %v2320_v24, %v2983_v10  ;;  %vm1478_vm5 = vweird.f32 %v2320_v24 }
 0x255   : > { %2321 = vrcp.f32 %v1456_v26  ;;  %v1498_v53 = vand.u32 2147483648, %v1456_v26  ;;  %v1496_v55 = vand.u32 2147483647, %v1456_v26  ;;  %vm3005_vm9 = vmor %vm1477_vm8, %vm1478_vm5  ;;  %vm1492_vm10 = vweird.f32 %v1456_v26 }
 0x256   : > { %v1613_v32 = vadd.f32 %v1612_v27, %v1611_v22  ;;  %v1623_v33 = vrot.slane %v1622_v28, 1  ;;  %v1474_v34 = vsub.f32 1.0, %v1473_v29  ;;  %v1465_v9 = vsel %vm1464_vm13, %v2986_v20, %v1461_v56  ;;  %v1505_v29 = vld [vmem:[#allocation4] sm:$0xf] }
 0x257   : > { %v1499_v6 = vor.u32 1.1754944e-38, %v1498_v53  ;;  %vm1497_vm14 = vcmp.eq.f32.partialorder %v1496_v55, 8.507059e+37  ;;  %v1470_v16 = vsel %vm1467_vm0, %v1469_v12, %v1465_v9 }
 0x258   : > { %v1624_v35 = vadd.f32 %v1623_v33, %v1622_v28  ;;  %v2991_v36 = vmul.f32 0.041666668, %v1613_v32  ;;  %v1475_v41 = vmul.f32 %v2320_v24, %v1474_v34  ;;  %v1502_v23 = vmul.f32 %v1470_v16, %v2956_v44 }
 0x25a   : > { %v1626_v38 = vmul.f32 0.041666668, %v1624_v35  ;;  %v1627_v39 = vmul.f32 %v2991_v36, %v2991_v36  ;;  %v1476_v49 = vadd.f32 %v2320_v24, %v1475_v41  ;;  %v1631_v27 = vsub.f32 %v2976_v2, %v2991_v36  ;;  %v2308_v2 = vld [vmem:[%s3219_s30] ss:$0 sm:$0xff] }
 0x25b   : > { %v2322_v40 = vpop.eup %2321 }
 0x25c   : > { %v1628_v42 = vsub.f32 %v1626_v38, %v1627_v39  ;;  %v1488_v43 = vmul.f32 %v2322_v40, %v1456_v26  ;;  %vm1493_vm6 = vweird.f32 %v2322_v40  ;;  %v1480_v4 = vsel %vm3005_vm9, %v2320_v24, %v1476_v49 }
 0x25d   : > { %vm1494_vm12 = vmor %vm1492_vm10, %vm1493_vm6  ;;  %v1485_v13 = vsel %vm1482_vm15, %v1484_v7, %v1480_v4  ;;  %v1630_v26 = vsub.f32 %v2963_v52, %v2991_v36 }
 0x25e   : > { %v2996_v47 = vadd.f32 1e-05, %v1628_v42  ;;  %v1489_v48 = vsub.f32 1.0, %v1488_v43  ;;  %v1503_v21 = vmul.f32 %v1485_v13, %v2961_v51  ;;  %v1507_v24 = vpack.c.bf16 %v1485_v13, %v1470_v16  ;;  %v2307_v51 = vld [vmem:[%s789_s2] ss:$0 sm:$0xff]  ;;  %s3224_s2 = sld [smem:[#allocation40_spill]] (!%p2174_p11) }
 0x25f   : > { %v1636_v52 = vmul.f32 %v2307_v51, %v1630_v26  ;;  %v1637_v32 = vmul.f32 %v2307_v51, %v1631_v27 }
 0x260   : > { %2323 = vrsqrt.f32 %v2996_v47  ;;  %v1490_v54 = vmul.f32 %v2322_v40, %v1489_v48  ;;  %v1506_v44 = vpack.c.bf16 %v1503_v21, %v1502_v23 }
 0x262   : > { %v1491_v62 = vadd.f32 %v2322_v40, %v1490_v54 }
 0x264   : > { %v1495_v8 = vsel %vm1494_vm12, %v2322_v40, %v1491_v62 }
 0x265   : > { %v1500_v10 = vsel %vm1497_vm14, %v1499_v6, %v1495_v8 }
 0x266   : > { %v2324_v11 = vpop.eup %2323  ;;  %v1504_v14 = vmul.f32 %v1500_v10, %v2970_v61  ;;  %v1509_v15 = vpack.c.bf16 %v1500_v10, %v1500_v10  ;;  %v1629_v61 = vsub.f32 %v2958_v45, %v2991_v36 }
 0x267   : > { %v1640_v60 = vmul.f32 %v2324_v11, %v2996_v47  ;;  %vm1646_vm1 = vweird.f32 %v2324_v11 }
 0x268   : > { %v1508_v17 = vpack.c.bf16 %v1504_v14, %v1504_v14  ;;  %v1518_v18 = vsel %vm1357_vm3, %v1509_v15, 0  ;;  %v1635_v45 = vmul.f32 %v2307_v51, %v1629_v61 }
 0x269   : > { %v1641_v19 = vmul.f32 %v2324_v11, %v1640_v60  ;;  %1539 = vmatpush.bf16.msra.mxu2 %v1518_v18 }
 0x26a   : > { %v1515_v20 = vsel %vm1357_vm3, %v1508_v17, 0  ;;  %vm1645_vm3 = vweird.f32 %v2996_v47 }
 0x26b   : > { %v1642_v22 = vmul.f32 0.5, %v1641_v19  ;;  %1526 = vmatpush.bf16.msra.mxu1 %v1515_v20  ;;  %vm1647_vm5 = vmor %vm1645_vm3, %vm1646_vm1 }
 0x26d   : > { %v1643_v28 = vsub.f32 1.5, %v1642_v22  ;;  %1540 = vmatpush.bf16.msra.mxu2 %v1507_v24 }
 0x26f   : > { %v1644_v30 = vmul.f32 %v2324_v11, %v1643_v28  ;;  %1527 = vmatpush.bf16.msra.mxu1 %v1506_v44  ;;  %v2309_v28 = vld [vmem:[%s3220_s12] ss:$0 sm:$0xff] }
 0x270   : > { %2173 = vmatmul.msk.bf16.vlgmr.msra.gmra.mxu2 %vm1510_vm2, %v1505_v29 }
 0x271   : > { %v1648_v33 = vsel %vm1647_vm5, %v2324_v11, %v1644_v30 }
 0x272   : > { %v1649_v34 = vmul.f32 %v1648_v33, %v1635_v45  ;;  %v1650_v35 = vmul.f32 %v1648_v33, %v1636_v52  ;;  %v1651_v36 = vmul.f32 %v1648_v33, %v1637_v32  ;;  %2172 = vmatmul.msk.bf16.vlgmr.msra.gmra.mxu1 %vm1510_vm2, %v1505_v29  ;;  %v2310_v45 = vld [vmem:[%s3221_s19] ss:$0 sm:$0xff] }
 0x274   : > { %v1655_v37 = vadd.f32 %v2308_v2, %v1649_v34  ;;  %v1656_v38 = vadd.f32 %v2308_v2, %v1650_v35  ;;  %v1657_v39 = vadd.f32 %v2308_v2, %v1651_v36 }
 0x276   : > { %v1658_v40 = vmax.f32 %v1655_v37, 0.0  ;;  %v1659_v41 = vmax.f32 %v1656_v38, 0.0  ;;  %v1660_v42 = vmax.f32 %v1657_v39, 0.0 }
 0x278   : > { %v1663_v43 = vadd.f32 %v1658_v40, %v2924_v0  ;;  %v1664_v46 = vadd.f32 %v1659_v41, %v2926_v1  ;;  %v1665_v47 = vadd.f32 %v1660_v42, %v2930_v3  ;;  %v1029_v1 = vperm.slane %v2935_v5, 0 }
 0x27a   : > { %1666 = vst [vmem:[#allocation12] sm:$0xff] %v1663_v43  ;;  %v1207_v6 = vadd.f32 %v2945_v25, %v1029_v1 }
 0x27b   : > { %1667 = vst [vmem:[#allocation12 + $0x8] sm:$0xff] %v1664_v46 }
 0x27c   : > { %1668 = vst [vmem:[#allocation12 + $0x10] sm:$0xff] %v1665_v47 }
 0x2ef   : > { %v1529_v48 = vpop.f32.mrf.mxu1 }
 0x2f3   : > { %v1542_v49 = vpop.f32.mrf.mxu2 }
 0x2f4   : > { %v1546_v50 = vadd.f32 1e-06, %v1542_v49 }
 0x2f6   : > { %2325 = vrcp.f32 %v1546_v50  ;;  %v1558_v58 = vand.u32 2147483648, %v1546_v50  ;;  %v1556_v0 = vand.u32 2147483647, %v1546_v50  ;;  %vm1552_vm7 = vweird.f32 %v1546_v50 }
 0x2f7   : > { %v1531_v53 = vpop.f32.mrf.mxu1 }
 0x2f8   : > { %v1559_v3 = vor.u32 1.1754944e-38, %v1558_v58  ;;  %vm1557_vm9 = vcmp.eq.f32.partialorder %v1556_v0, 8.507059e+37 }
 0x2fb   : > { %v1544_v54 = vpop.f32.mrf.mxu2 }
 0x2fc   : > { %v2326_v55 = vpop.eup %2325 }
 0x2fd   : > { %v1548_v56 = vmul.f32 %v2326_v55, %v1546_v50  ;;  %vm1553_vm6 = vweird.f32 %v2326_v55 }
 0x2fe   : > { %vm1554_vm8 = vmor %vm1552_vm7, %vm1553_vm6 }
 0x2ff   : > { %v1549_v57 = vsub.f32 1.0, %v1548_v56 }
 0x301   : > { %v1550_v59 = vmul.f32 %v2326_v55, %v1549_v57 }
 0x303   : > { %v1551_v62 = vadd.f32 %v2326_v55, %v1550_v59 }
 0x305   : > { %v1555_v63 = vsel %vm1554_vm8, %v2326_v55, %v1551_v62 }
 0x306   : > { %v1560_v4 = vsel %vm1557_vm9, %v1559_v3, %v1555_v63 }
 0x307   : > { %v1561_v7 = vmul.f32 %v1560_v4, %v1529_v48 }
 0x309   : > { %v1562_v8 = vadd.f32 %v1561_v7, %v1207_v6 }
 0x30b   : > { %v1565_v9 = vrot.slane %v1562_v8, 4  ;;  %v1571_v10 = vmul.f32 %v1562_v8, %v1562_v8 }
 0x30d   : > { %v1566_v11 = vadd.f32 %v1565_v9, %v1562_v8  ;;  %v1572_v12 = vrot.slane %v1571_v10, 4 }
 0x30f   : > { %v1567_v13 = vrot.slane %v1566_v11, 2  ;;  %v1573_v14 = vadd.f32 %v1572_v12, %v1571_v10 }
 0x311   : > { %v1568_v15 = vadd.f32 %v1567_v13, %v1566_v11  ;;  %v1574_v60 = vrot.slane %v1573_v14, 2 }
 0x313   : > { %v1569_v5 = vrot.slane %v1568_v15, 1  ;;  %v1575_v16 = vadd.f32 %v1574_v60, %v1573_v14 }
 0x315   : > { %v1570_v17 = vadd.f32 %v1569_v5, %v1568_v15  ;;  %v1576_v18 = vrot.slane %v1575_v16, 1 }
 0x317   : > { %v1577_v19 = vadd.f32 %v1576_v18, %v1575_v16  ;;  %v1578_v21 = vmul.f32 0.125, %v1570_v17 }
 0x319   : > { %v1579_v20 = vmul.f32 0.125, %v1577_v19  ;;  %v1580_v22 = vmul.f32 %v1578_v21, %v1578_v21  ;;  %v1582_v51 = vsub.f32 %v1562_v8, %v1578_v21 }
 0x31b   : > { %v1581_v25 = vsub.f32 %v1579_v20, %v1580_v22  ;;  %v1586_v30 = vmul.f32 %v2309_v28, %v1582_v51 }
 0x31d   : > { %v1587_v23 = vadd.f32 1e-05, %v1581_v25 }
 0x31f   : > { %2327 = vrsqrt.f32 %v1587_v23  ;;  %vm1594_vm11 = vweird.f32 %v1587_v23 }
 0x325   : > { %v2328_v24 = vpop.eup %2327 }
 0x326   : > { %v1589_v61 = vmul.f32 %v2328_v24, %v1587_v23  ;;  %vm1595_vm10 = vweird.f32 %v2328_v24 }
 0x327   : > { %vm1596_vm12 = vmor %vm1594_vm11, %vm1595_vm10 }
 0x328   : > { %v1590_v26 = vmul.f32 %v2328_v24, %v1589_v61 }
 0x32a   : > { %v1591_v27 = vmul.f32 0.5, %v1590_v26 }
 0x32c   : > { %v1592_v44 = vsub.f32 1.5, %v1591_v27 }
 0x32e   : > { %v1593_v29 = vmul.f32 %v2328_v24, %v1592_v44 }
 0x330   : > { %v1597_v52 = vsel %vm1596_vm12, %v2328_v24, %v1593_v29 }
 0x331   : > { %v1598_v32 = vmul.f32 %v1597_v52, %v1586_v30 }
 0x333   : > { %v1602_v2 = vadd.f32 %v2310_v45, %v1598_v32 }
 0x335   : > { %v1603_v33 = vmax.f32 %v1602_v2, 0.0  ;;  %1672 = sbr.rel (%p2174_p11) target bundleno = 1087 (0x43f), region = 186 }
 0x337   : > { %v1661_v34 = vadd.f32 %v1603_v33, %v2898_v31 }
 0x339   : > { %1662 = vst [vmem:[#allocation11] sm:$0xff] %v1661_v34 }
 0x33a   : > { %v1674_v35 = vld [vmem:[%s3170_s18] sm:$0xff]  ;;  %v1718_v37 = vld [vmem:[%s3172_s20 + $0x78] sm:$0xff]  ;;  %v1717_v31 = vld [vmem:[%s3172_s20 + $0x70] sm:$0xff] }
 0x33b   : > { %v1673_v36 = vld [vmem:[%s3222_s28] sm:$0x3]  ;;  %1697 = vmatpush.msra.mxu0 %v1674_v35  ;;  %1723 = vmatpush.msra.mxu1 %v1718_v37  ;;  %v1716_v38 = vld [vmem:[%s3172_s20 + $0x68] sm:$0xff]  ;;  %v1714_v40 = vld [vmem:[%s3172_s20 + $0x58] sm:$0xff] }
 0x33c   : > { %2175 = vmatmul.msk.f32.vlgmr.msra.gmra.mxu0 %vm1350_vm4, %v1673_v36  ;;  %v1715_v39 = vld [vmem:[%s3172_s20 + $0x60] sm:$0xff]  ;;  %v1713_v41 = vld [vmem:[%s3172_s20 + $0x50] sm:$0xff]  ;;  %v1712_v42 = vld [vmem:[%s3172_s20 + $0x48] sm:$0xff]  ;;  %vm1743_vm4 = vcmask 74752  }
 0x33d   : > { %1724 = vmatpush.msra.mxu1 %v1717_v31  ;;  %v1711_v43 = vld [vmem:[%s3172_s20 + $0x40] sm:$0xff]  ;;  %v1710_v46 = vld [vmem:[%s3172_s20 + $0x38] sm:$0xff]  ;;  %v1709_v47 = vld [vmem:[%s3172_s20 + $0x30] sm:$0xff] }
 0x33e   : > { %v1708_v48 = vld [vmem:[%s3172_s20 + $0x28] sm:$0xff]  ;;  %v1707_v49 = vld [vmem:[%s3172_s20 + $0x20] sm:$0xff]  ;;  %v1706_v50 = vld [vmem:[%s3172_s20 + $0x18] sm:$0xff] }
 0x33f   : > { %1725 = vmatpush.msra.mxu1 %v1716_v38  ;;  %v1705_v53 = vld [vmem:[%s3172_s20 + $0x10] sm:$0xff]  ;;  %v1704_v54 = vld [vmem:[%s3172_s20 + $0x8] sm:$0xff]  ;;  %v1703_v55 = vld [vmem:[%s3172_s20] sm:$0xff] }
 0x340   : > { %v2329_v56 = vld [vmem:[%s3223_s22] ss:$0 sm:$0xff] }
 0x341   : > { %1726 = vmatpush.msra.mxu1 %v1715_v39  ;;  %v2330_v0 = vld [vmem:[%s3224_s2] ss:$0 sm:$0xff] }
 0x343   : > { %1727 = vmatpush.msra.mxu1 %v1714_v40 }
 0x345   : > { %1728 = vmatpush.msra.mxu1 %v1713_v41 }
 0x347   : > { %1729 = vmatpush.msra.mxu1 %v1712_v42 }
 0x349   : > { %1730 = vmatpush.msra.mxu1 %v1711_v43 }
 0x34b   : > { %1731 = vmatpush.msra.mxu1 %v1710_v46 }
 0x34d   : > { %1732 = vmatpush.msra.mxu1 %v1709_v47 }
 0x34f   : > { %1733 = vmatpush.msra.mxu1 %v1708_v48 }
 0x351   : > { %1734 = vmatpush.msra.mxu1 %v1707_v49 }
 0x353   : > { %1735 = vmatpush.msra.mxu1 %v1706_v50 }
 0x355   : > { %1736 = vmatpush.msra.mxu1 %v1705_v53 }
 0x357   : > { %1737 = vmatpush.msra.mxu1 %v1704_v54 }
 0x359   : > { %1738 = vmatpush.msra.mxu1 %v1703_v55 }
 0x3b9   : > { %v1699_v57 = vpop.f32.mrf.mxu0 }
 0x3ba   : > { %v1700_v58 = vadd.f32 %v2329_v56, %v1699_v57 }
 0x3bc   : > { %v1702_v59 = vmax.f32 %v1700_v58, 0.0 }
 0x3be   : > { %1739 = vmatmul.f32.vlgmr.msra.gmra.mxu1 %v1702_v59 }
 0x43b   : > { %v1740_v1 = vpop.f32.mrf.mxu1 }
 0x43c   : > { %v1741_v62 = vadd.f32 %v2330_v0, %v1740_v1 }
 0x43e   : > { %1744 = vst.msk [vmem:[#allocation14] sm:$0x3] %vm1743_vm4, %v1741_v62 }
 0x43f PF: > { %p2257_p2 = scmp.eq.s32.totalorder %s2682_s6, 4  ;;  %s2533_s8 = smov [#allocation12]  }
 0x440   : > { %s1762_s12 = sshll.u32 %s2533_s8, 4  ;;  %s3225_s19 = sld [smem:[#allocation42_spill]]  ;;  %s1763_s12 = int_to_ptr.vmem [resolvable:$true] %s1762_s12 }
 0x441   : > { %s2534_s4 = smov 128   ;;  %s2535_s5 = smov 8  }
 0x442   : > { %s3226_s10 = sld [smem:[#allocation41_spill]]  ;;  %s2536_s22 = smov [#allocation11]  }
 0x443   : > { %s1751_s25 = sshll.u32 %s2536_s22, 4  ;;  %s2537_s30 = smov [#allocation14]   ;;  %s1752_s25 = int_to_ptr.vmem [resolvable:$true] %s1751_s25 }
 0x444   : > { %s1777_s2 = sshll.u32 %s2537_s30, 4  ;;  %s3227_s21 = sld [smem:[#allocation43_spill]]  ;;  %s1778_s2 = int_to_ptr.vmem [resolvable:$true] %s1777_s2 }
 0x446   : > { %s1764_s0 = sshll.u32 %s3225_s19, 4  ;;  %s1765_s0 = int_to_ptr.hbm [resolvable:$true] %s1764_s0 }
 0x447   : > { %2240 = dma.vmem_to_hbm [thread:$0]  (%p2257_p2), %s1763_s12, 384, %s1765_s0, [#allocation13], %s2534_s4, %s2534_s4, %s2535_s5  }
 0x448   : > { %s1753_s3 = sshll.u32 %s3226_s10, 4  ;;  %s1754_s3 = int_to_ptr.hbm [resolvable:$true] %s1753_s3 }
 0x449   : > { %2238 = dma.vmem_to_hbm [thread:$0]  (%p2257_p2), %s1752_s25, 128, %s1754_s3, [#allocation8]  }
 0x44a   : > { %s1779_s19 = sshll.u32 %s3227_s21, 4  ;;  %s1780_s19 = int_to_ptr.hbm [resolvable:$true] %s1779_s19 }
 0x44b   : > { %2242 = dma.vmem_to_hbm [thread:$0]  (%p2257_p2), %s1778_s2, 32, %s1780_s19, [#allocation13]  }
 0x44c   : > { %2506 = dma.done.wait (%p2257_p2), [#allocation8], 128  }
 0x44d   : > { %2508 = vsyncadd (%p2257_p2), [#allocation8], 4294967168 }
 0x44e   : > { %2510 = dma.done.wait (%p2257_p2), [#allocation13], 416  }
 0x44f   : > { %2512 = vsyncadd (%p2257_p2), [#allocation13], 4294966880 }
 0x450 PF: > { %s3228_s28 = sld [smem:[#allocation26_spill]]  ;;  %s3231_s5 = smov %s2519_s26 }
 0x451   : > { %s3229_s12 = sld [smem:[#allocation25_spill]] }
 0x452   : > { %s3230_s27 = sld [smem:[#allocation27_spill]] }
 0x456   : > { %p40_p3 = scmp.ge.s32.totalorder %s3228_s28, 7  }
 0x457   : > { %s3232_s26 = smov %s3229_s12 }
 0x458   :  { %42 = sbr.rel (!%p40_p3) target bundleno = 24 (0x18), region = 290 }
 0x45d   :  { %1803 = vsyncpa [#allocation7], 1 }
 0x45e   :  { %1805 = vsyncpa [#allocation7 + $0x1], 1 }
 0x45f   :  { %1806 = vsyncpa [#allocation10], 1 }
 0x460   :  { %1808 = vsyncpa [#allocation10 + $0x1], 1 }
 0x461   :  { %1809 = vsyncpa [#allocation8], 1 }
 0x462   :  { %1811 = vsyncpa [#allocation8 + $0x1], 1 }
 0x463   :  { %1812 = vsyncpa [#allocation13], 1 }
 0x464   :  { %1813 = vsyncmov [#allocation5] }
 0x467   :  { %s1814_s6 = vpop.sfrf %1813 }
 0x468   :  { %p2184_p4 = scmp.ne.s32.totalorder %s1814_s6, 0 }
 0x46a   :  { %1818 = shalt.err (%p2184_p4)  }
 0x46b   :  { %1820 = vsyncmov [#allocation5 + $0x1] }
 0x46e   :  { %s1821_s0 = vpop.sfrf %1820 }
 0x46f   :  { %p2185_p5 = scmp.ne.s32.totalorder %s1821_s0, 0 }
 0x471   :  { %1825 = shalt.err (%p2185_p5)  }
 0x472   :  { %1827 = vsyncmov [#allocation5 + $0x2] }
 0x475   :  { %s1828_s4 = vpop.sfrf %1827 }
 0x476   :  { %p2186_p6 = scmp.ne.s32.totalorder %s1828_s4, 0 }
 0x478   :  { %1832 = shalt.err (%p2186_p6)  }

</bundles_post_ra>
